<compile_context>
chip_gen: v5e
topology: v5e:2x2
jax: 0.10.0
libtpu: 0.0.40
codegen_flags: <defaults>
</compile_context>

<pallas_src>
import math

import jax
import jax.numpy as jnp
from jax import lax
from jax.experimental import pallas as pl
from jax.experimental.pallas import tpu as pltpu

S_SCALE = 30.0       # s in the module
M_MARGIN = 1.5       # m in the module
NORM_EPS = 1e-12     # F.normalize default eps (we clamp norm^2 by eps^2; equivalent here)
CLAMP_EPS = 1e-5     # acos input clamp
NEG_BIG = -1e30      # -inf surrogate for padded class columns

# Abramowitz & Stegun 4.4.46: acos(x) ~= sqrt(1-x) * poly(x) on [0,1], |err| <= 2e-8.
_ACOS_C = (1.5707963050, -0.2145988016, 0.0889789874, -0.0501743046,
           0.0308918810, -0.0170881256, 0.0066700901, -0.0012624911)


def _acos(x):
    """Elementwise arccos via A&S 4.4.46 (sqrt -> EUP slot, Horner polynomial -> VPU)."""
    ax = jnp.abs(x)
    p = _ACOS_C[7]
    for c in (_ACOS_C[6], _ACOS_C[5], _ACOS_C[4], _ACOS_C[3],
              _ACOS_C[2], _ACOS_C[1], _ACOS_C[0]):
        p = p * ax + c
    pos = jnp.sqrt(1.0 - ax) * p
    return jnp.where(x >= 0.0, pos, math.pi - pos)


def gasoftmax_loss(x, w, y, *, tile_n=128, mxu_dtype=jnp.float32):
    """Fused GAsoftmax forward loss.

    x: (N, D) features, w: (D, C) class weights, y: (N,) int class ids.
    mxu_dtype: set to jnp.bfloat16 on v6e/v7x for full-rate MXU; kept f32 by default so the
    result tracks the torch f32 matmul closely (elementwise/softmax math is always f32).
    """
    n, d = x.shape
    d2, c = w.shape
    assert d2 == d, (x.shape, w.shape)

    # Lane-dense class dimension: pad C up to a multiple of 128 (zero columns, masked below).
    c_pad = max(128, ((c + 127) // 128) * 128)
    w_p = w.astype(jnp.float32)
    if c_pad != c:
        w_p = jnp.pad(w_p, ((0, 0), (0, c_pad - c)))

    if n < tile_n:
        tile_n = n                      # single full-extent block
    num_tiles = pl.cdiv(n, tile_n)

    # TODO(synk): y rides along as a (tile_n, 1) int32 VMEM block (the lane-iota compare needs
    # it in vregs); an SMEM/scalar-prefetch variant would only save ~tile_n*512B of VMEM.
    y2 = y.reshape(n, 1).astype(jnp.int32)

    inv_n = 1.0 / n

    def kernel(x_ref, w_ref, y_ref, o_ref, wn_ref):
        i = pl.program_id(0)

        # --- once: column-normalize w into the resident VMEM scratch; zero the accumulator.
        @pl.when(i == 0)
        def _init():
            wv = w_ref[...]                                           # (D, C_pad) f32
            col_ss = jnp.sum(wv * wv, axis=0, keepdims=True)          # (1, C_pad)
            wn_ref[...] = wv * lax.rsqrt(jnp.maximum(col_ss, NORM_EPS * NORM_EPS))
            o_ref[...] = jnp.zeros_like(o_ref)

        # --- row-normalize this batch tile of x (rsqrt: one EUP op + VPU mul).
        xt = x_ref[...].astype(jnp.float32)                           # (tile_n, D)
        row_ss = jnp.sum(xt * xt, axis=1, keepdims=True)              # (tile_n, 1)
        x_n = xt * lax.rsqrt(jnp.maximum(row_ss, NORM_EPS * NORM_EPS))

        # --- cos_theta on the MXU, clamp, in-kernel acos.
        cos = jnp.dot(x_n.astype(mxu_dtype), wn_ref[...].astype(mxu_dtype),
                      preferred_element_type=jnp.float32)             # (tile_n, C_pad)
        cos = jnp.clip(cos, -1.0 + CLAMP_EPS, 1.0 - CLAMP_EPS)
        theta = _acos(cos)

        # --- scatter-multiply the target-class angle by m, build logits.
        yv = y_ref[...]                                               # (tile_n, 1) int32
        cls = lax.broadcasted_iota(jnp.int32, theta.shape, 1)         # (tile_n, C_pad)
        onehot = cls == yv
        theta_m = jnp.where(onehot, theta * M_MARGIN, theta)
        logits = S_SCALE * (1.0 - 0.63662 * theta_m)
        logits = jnp.where(cls < c, logits, NEG_BIG)                  # mask padded classes

        # --- numerically stable softmax cross-entropy; rows beyond global N masked out.
        row_max = jnp.max(logits, axis=1, keepdims=True)              # (tile_n, 1)
        lse = jnp.log(jnp.sum(jnp.exp(logits - row_max), axis=1, keepdims=True)) + row_max
        tgt = jnp.sum(jnp.where(onehot, logits, 0.0), axis=1, keepdims=True)
        per_row = lse - tgt                                           # (tile_n, 1)

        rows = i * tile_n + lax.broadcasted_iota(jnp.int32, per_row.shape, 0)
        per_row = jnp.where(rows < n, per_row, 0.0)

        # Running sum in the resident (1,1) output block; finalize with 1/N on the last tile.
        o_ref[...] += jnp.sum(per_row, axis=0, keepdims=True)

        @pl.when(i == num_tiles - 1)
        def _fin():
            o_ref[...] = o_ref[...] * inv_n

        # TODO(synk): a v7x 2-TC "parallel" batch axis would need per-core partial sums; the
        # scalar accumulator forces this (reduction) axis to stay "arbitrary".

    loss = pl.pallas_call(
        kernel,
        out_shape=jax.ShapeDtypeStruct((1, 1), jnp.float32),
        grid=(num_tiles,),
        in_specs=[
            pl.BlockSpec((tile_n, d), lambda i: (i, 0)),        # x tile, pipelined over N
            pl.BlockSpec((d, c_pad), lambda i: (0, 0)),         # w, resident (fetched once)
            pl.BlockSpec((tile_n, 1), lambda i: (i, 0)),        # y tile
        ],
        out_specs=pl.BlockSpec((1, 1), lambda i: (0, 0)),       # resident scalar accumulator
        scratch_shapes=[pltpu.VMEM((d, c_pad), jnp.float32)],   # cached normalized w
        compiler_params=pltpu.CompilerParams(
            dimension_semantics=("arbitrary",)),                # batch axis is a reduction
    )(x, w_p, y2)
    return loss[0, 0]


def _reference_loss(x, w, y):
    """Pure-JAX reference mirroring the PyTorch forward, for a sanity check."""
    x_n = x / jnp.maximum(jnp.linalg.norm(x, axis=1, keepdims=True), NORM_EPS)
    w_n = w / jnp.maximum(jnp.linalg.norm(w, axis=0, keepdims=True), NORM_EPS)
    cos = jnp.clip(x_n @ w_n, -1.0 + CLAMP_EPS, 1.0 - CLAMP_EPS)
    theta = jnp.arccos(cos)
    onehot = jax.nn.one_hot(y, w.shape[1], dtype=jnp.float32)
    theta_scat = jnp.where(onehot > 0, theta * M_MARGIN, theta)
    logits = S_SCALE * (1.0 - 0.63662 * theta_scat)
    logp = jax.nn.log_softmax(logits, axis=1)
    return -jnp.mean(jnp.sum(onehot * logp, axis=1))


if __name__ == "__main__":
    key = jax.random.PRNGKey(0)
    kx, kw, ky = jax.random.split(key, 3)

    # Small but exercises the tiled path: 300 rows -> 3 batch tiles of 128 (last one ragged),
    # class dim padded 16 -> 128 lanes.
    N, FEAT_DIM, NUM_CLASS = 300, 32, 16
    x = jax.random.normal(kx, (N, FEAT_DIM), dtype=jnp.float32)
    # deterministic xavier_normal_-style init for w (feat_dim, num_class)
    std = math.sqrt(2.0 / (FEAT_DIM + NUM_CLASS))
    w = std * jax.random.normal(kw, (FEAT_DIM, NUM_CLASS), dtype=jnp.float32)
    y = jax.random.randint(ky, (N,), 0, NUM_CLASS, dtype=jnp.int32)

    loss = jax.jit(gasoftmax_loss)(x, w, y)
    jax.block_until_ready(loss)

    ref = _reference_loss(x, w, y)
    assert jnp.isfinite(loss), "loss is not finite"
    assert jnp.allclose(loss, ref, rtol=1e-4, atol=1e-4), (loss, ref)

    print("KERNEL_OK")
</pallas_src>

<mosaic_0001>
module attributes {stable_mosaic.version = 11 : i64} {
  func.func @kernel(%arg0: i32, %arg1: memref<128x32xf32, #tpu.memory_space<vmem>>, %arg2: memref<32x128xf32, #tpu.memory_space<vmem>>, %arg3: memref<128x1xi32, #tpu.memory_space<vmem>>, %arg4: memref<1x1xf32, #tpu.memory_space<vmem>>, %arg5: memref<32x128xf32, #tpu.memory_space<vmem>>) attributes {dimension_semantics = [#tpu.dimension_semantics<arbitrary>], iteration_bounds = array<i64: 3>, scalar_prefetch = 0 : i64, scratch_operands = 1 : i64, tpu.core_type = #tpu.core_type<tc>, window_params = [{transform_indices = @transform_0, window_bounds = array<i64: 128, 32>}, {pipeline_mode = #tpu.pipeline_mode<synchronous>, transform_indices = @transform_1, window_bounds = array<i64: 32, 128>}, {transform_indices = @transform_2, window_bounds = array<i64: 128, 1>}, {pipeline_mode = #tpu.pipeline_mode<synchronous>, transform_indices = @transform_3, window_bounds = array<i64: 1, 1>}]} {
    %c0_i32 = arith.constant 0 : i32
    %0 = arith.cmpi eq, %arg0, %c0_i32 : i32
    %1 = arith.extui %0 : i1 to i32
    %c0_i32_0 = arith.constant 0 : i32
    %2 = arith.cmpi ne, %1, %c0_i32_0 : i32
    scf.if %2 {
      %c0_37 = arith.constant 0 : index
      %c0_38 = arith.constant 0 : index
      %97 = vector.load %arg2[%c0_37, %c0_38] : memref<32x128xf32, #tpu.memory_space<vmem>>, vector<32x128xf32>
      %98 = arith.mulf %97, %97 : vector<32x128xf32>
      %cst_39 = arith.constant dense<0.000000e+00> : vector<128xf32>
      %99 = vector.multi_reduction <add>, %98, %cst_39 [0] : vector<32x128xf32> to vector<128xf32>
      %100 = vector.shape_cast %99 : vector<128xf32> to vector<1x128xf32>
      %cst_40 = arith.constant 1.000000e-24 : f32
      %101 = vector.broadcast %cst_40 : f32 to vector<1x128xf32>
      %102 = arith.maximumf %100, %101 : vector<1x128xf32>
      %103 = math.rsqrt %102 : vector<1x128xf32>
      %104 = vector.broadcast %103 : vector<1x128xf32> to vector<32x128xf32>
      %105 = arith.mulf %97, %104 : vector<32x128xf32>
      %c0_41 = arith.constant 0 : index
      %c0_42 = arith.constant 0 : index
      %106 = vector.load %arg5[%c0_41, %c0_42] : memref<32x128xf32, #tpu.memory_space<vmem>>, vector<32x128xf32>
      tpu.vector_store %arg5[%c0_41, %c0_42], %105 {strides = array<i32>} : memref<32x128xf32, #tpu.memory_space<vmem>>, vector<32x128xf32>,
      %cst_43 = arith.constant 0.000000e+00 : f32
      %107 = vector.broadcast %cst_43 : f32 to vector<1x1xf32>
      %c0_44 = arith.constant 0 : index
      %c0_45 = arith.constant 0 : index
      %108 = vector.load %arg4[%c0_44, %c0_45] : memref<1x1xf32, #tpu.memory_space<vmem>>, vector<1x1xf32>
      tpu.vector_store %arg4[%c0_44, %c0_45], %107 {strides = array<i32>} : memref<1x1xf32, #tpu.memory_space<vmem>>, vector<1x1xf32>,
    } else {
    }
    %c0 = arith.constant 0 : index
    %c0_1 = arith.constant 0 : index
    %3 = vector.load %arg1[%c0, %c0_1] : memref<128x32xf32, #tpu.memory_space<vmem>>, vector<128x32xf32>
    %4 = arith.mulf %3, %3 : vector<128x32xf32>
    %cst = arith.constant dense<0.000000e+00> : vector<128xf32>
    %5 = vector.multi_reduction <add>, %4, %cst [1] : vector<128x32xf32> to vector<128xf32>
    %6 = vector.shape_cast %5 : vector<128xf32> to vector<128x1xf32>
    %cst_2 = arith.constant 1.000000e-24 : f32
    %7 = vector.broadcast %cst_2 : f32 to vector<128x1xf32>
    %8 = arith.maximumf %6, %7 : vector<128x1xf32>
    %9 = math.rsqrt %8 : vector<128x1xf32>
    %10 = vector.broadcast %9 : vector<128x1xf32> to vector<128x32xf32>
    %11 = arith.mulf %3, %10 : vector<128x32xf32>
    %c0_3 = arith.constant 0 : index
    %c0_4 = arith.constant 0 : index
    %12 = vector.load %arg5[%c0_3, %c0_4] : memref<32x128xf32, #tpu.memory_space<vmem>>, vector<32x128xf32>
    %cst_5 = arith.constant dense<0.000000e+00> : vector<128x128xf32>
    %13 = tpu.matmul %11, %12, %cst_5 {dimension_numbers = #tpu.dot_dimension_numbers<[1], [0], [0], [1], [0, 0, 1, 1], [], []>} : vector<128x32xf32>, vector<32x128xf32>, vector<128x128xf32> -> vector<128x128xf32>
    %cst_6 = arith.constant -0.999989986 : f32
    %cst_7 = arith.constant 0.999989986 : f32
    %14 = vector.broadcast %cst_6 : f32 to vector<128x128xf32>
    %15 = arith.maximumf %14, %13 : vector<128x128xf32>
    %16 = vector.broadcast %cst_7 : f32 to vector<128x128xf32>
    %17 = arith.minimumf %16, %15 : vector<128x128xf32>
    %18 = math.absf %17 : vector<128x128xf32>
    %cst_8 = arith.constant -0.0012624911 : f32
    %19 = vector.broadcast %cst_8 : f32 to vector<128x128xf32>
    %20 = arith.mulf %19, %18 : vector<128x128xf32>
    %cst_9 = arith.constant 6.670090e-03 : f32
    %21 = vector.broadcast %cst_9 : f32 to vector<128x128xf32>
    %22 = arith.addf %20, %21 : vector<128x128xf32>
    %23 = arith.mulf %22, %18 : vector<128x128xf32>
    %cst_10 = arith.constant -0.0170881264 : f32
    %24 = vector.broadcast %cst_10 : f32 to vector<128x128xf32>
    %25 = arith.addf %23, %24 : vector<128x128xf32>
    %26 = arith.mulf %25, %18 : vector<128x128xf32>
    %cst_11 = arith.constant 0.0308918804 : f32
    %27 = vector.broadcast %cst_11 : f32 to vector<128x128xf32>
    %28 = arith.addf %26, %27 : vector<128x128xf32>
    %29 = arith.mulf %28, %18 : vector<128x128xf32>
    %cst_12 = arith.constant -0.0501743034 : f32
    %30 = vector.broadcast %cst_12 : f32 to vector<128x128xf32>
    %31 = arith.addf %29, %30 : vector<128x128xf32>
    %32 = arith.mulf %31, %18 : vector<128x128xf32>
    %cst_13 = arith.constant 0.0889789909 : f32
    %33 = vector.broadcast %cst_13 : f32 to vector<128x128xf32>
    %34 = arith.addf %32, %33 : vector<128x128xf32>
    %35 = arith.mulf %34, %18 : vector<128x128xf32>
    %cst_14 = arith.constant -0.214598805 : f32
    %36 = vector.broadcast %cst_14 : f32 to vector<128x128xf32>
    %37 = arith.addf %35, %36 : vector<128x128xf32>
    %38 = arith.mulf %37, %18 : vector<128x128xf32>
    %cst_15 = arith.constant 1.57079625 : f32
    %39 = vector.broadcast %cst_15 : f32 to vector<128x128xf32>
    %40 = arith.addf %38, %39 : vector<128x128xf32>
    %cst_16 = arith.constant 1.000000e+00 : f32
    %41 = vector.broadcast %cst_16 : f32 to vector<128x128xf32>
    %42 = arith.subf %41, %18 : vector<128x128xf32>
    %43 = math.sqrt %42 : vector<128x128xf32>
    %44 = arith.mulf %43, %40 : vector<128x128xf32>
    %cst_17 = arith.constant 0.000000e+00 : f32
    %45 = vector.broadcast %cst_17 : f32 to vector<128x128xf32>
    %46 = arith.cmpf oge, %17, %45 : vector<128x128xf32>
    %cst_18 = arith.constant 3.14159274 : f32
    %47 = vector.broadcast %cst_18 : f32 to vector<128x128xf32>
    %48 = arith.subf %47, %44 : vector<128x128xf32>
    %49 = arith.select %46, %44, %48 : vector<128x128xi1>, vector<128x128xf32>
    %c0_19 = arith.constant 0 : index
    %c0_20 = arith.constant 0 : index
    %50 = vector.load %arg3[%c0_19, %c0_20] : memref<128x1xi32, #tpu.memory_space<vmem>>, vector<128x1xi32>
    %51 = tpu.iota {dimensions = array<i32: 1>} : vector<128x128xi32>
    %52 = vector.broadcast %50 : vector<128x1xi32> to vector<128x128xi32>
    %53 = arith.cmpi eq, %51, %52 : vector<128x128xi32>
    %cst_21 = arith.constant 1.500000e+00 : f32
    %54 = vector.broadcast %cst_21 : f32 to vector<128x128xf32>
    %55 = arith.mulf %49, %54 : vector<128x128xf32>
    %56 = arith.select %53, %55, %49 : vector<128x128xi1>, vector<128x128xf32>
    %cst_22 = arith.constant 0.636619985 : f32
    %57 = vector.broadcast %cst_22 : f32 to vector<128x128xf32>
    %58 = arith.mulf %57, %56 : vector<128x128xf32>
    %cst_23 = arith.constant 1.000000e+00 : f32
    %59 = vector.broadcast %cst_23 : f32 to vector<128x128xf32>
    %60 = arith.subf %59, %58 : vector<128x128xf32>
    %cst_24 = arith.constant 3.000000e+01 : f32
    %61 = vector.broadcast %cst_24 : f32 to vector<128x128xf32>
    %62 = arith.mulf %61, %60 : vector<128x128xf32>
    %c16_i32 = arith.constant 16 : i32
    %63 = vector.broadcast %c16_i32 : i32 to vector<128x128xi32>
    %64 = arith.cmpi slt, %51, %63 : vector<128x128xi32>
    %cst_25 = arith.constant -1.000000e+30 : f32
    %65 = vector.broadcast %cst_25 : f32 to vector<128x128xf32>
    %66 = arith.select %64, %62, %65 : vector<128x128xi1>, vector<128x128xf32>
    %cst_26 = arith.constant dense<0xFF800000> : vector<128xf32>
    %67 = vector.multi_reduction <maximumf>, %66, %cst_26 [1] : vector<128x128xf32> to vector<128xf32>
    %68 = vector.shape_cast %67 : vector<128xf32> to vector<128x1xf32>
    %69 = vector.broadcast %68 : vector<128x1xf32> to vector<128x128xf32>
    %70 = arith.subf %66, %69 : vector<128x128xf32>
    %71 = math.exp %70 : vector<128x128xf32>
    %cst_27 = arith.constant dense<0.000000e+00> : vector<128xf32>
    %72 = vector.multi_reduction <add>, %71, %cst_27 [1] : vector<128x128xf32> to vector<128xf32>
    %73 = vector.shape_cast %72 : vector<128xf32> to vector<128x1xf32>
    %74 = math.log %73 : vector<128x1xf32>
    %75 = arith.addf %74, %68 : vector<128x1xf32>
    %cst_28 = arith.constant 0.000000e+00 : f32
    %76 = vector.broadcast %cst_28 : f32 to vector<128x128xf32>
    %77 = arith.select %53, %66, %76 : vector<128x128xi1>, vector<128x128xf32>
    %cst_29 = arith.constant dense<0.000000e+00> : vector<128xf32>
    %78 = vector.multi_reduction <add>, %77, %cst_29 [1] : vector<128x128xf32> to vector<128xf32>
    %79 = vector.shape_cast %78 : vector<128xf32> to vector<128x1xf32>
    %80 = arith.subf %75, %79 : vector<128x1xf32>
    %c128_i32 = arith.constant 128 : i32
    %81 = arith.muli %arg0, %c128_i32 : i32
    %82 = tpu.iota {dimensions = array<i32: 0>} : vector<128x1xi32>
    %83 = vector.broadcast %81 : i32 to vector<128x1xi32>
    %84 = arith.addi %83, %82 : vector<128x1xi32>
    %c300_i32 = arith.constant 300 : i32
    %85 = vector.broadcast %c300_i32 : i32 to vector<128x1xi32>
    %86 = arith.cmpi slt, %84, %85 : vector<128x1xi32>
    %cst_30 = arith.constant 0.000000e+00 : f32
    %87 = vector.broadcast %cst_30 : f32 to vector<128x1xf32>
    %88 = arith.select %86, %80, %87 : vector<128x1xi1>, vector<128x1xf32>
    %c0_31 = arith.constant 0 : index
    %c0_32 = arith.constant 0 : index
    %89 = vector.load %arg4[%c0_31, %c0_32] : memref<1x1xf32, #tpu.memory_space<vmem>>, vector<1x1xf32>
    %cst_33 = arith.constant dense<0.000000e+00> : vector<1xf32>
    %90 = vector.multi_reduction <add>, %88, %cst_33 [0] : vector<128x1xf32> to vector<1xf32>
    %91 = vector.shape_cast %90 : vector<1xf32> to vector<1x1xf32>
    %92 = arith.addf %89, %91 : vector<1x1xf32>
    %c0_34 = arith.constant 0 : index
    %c0_35 = arith.constant 0 : index
    %93 = vector.load %arg4[%c0_34, %c0_35] : memref<1x1xf32, #tpu.memory_space<vmem>>, vector<1x1xf32>
    tpu.vector_store %arg4[%c0_34, %c0_35], %92 {strides = array<i32>} : memref<1x1xf32, #tpu.memory_space<vmem>>, vector<1x1xf32>,
    %c2_i32 = arith.constant 2 : i32
    %94 = arith.cmpi eq, %arg0, %c2_i32 : i32
    %95 = arith.extui %94 : i1 to i32
    %c0_i32_36 = arith.constant 0 : i32
    %96 = arith.cmpi ne, %95, %c0_i32_36 : i32
    scf.if %96 {
      %c0_37 = arith.constant 0 : index
      %c0_38 = arith.constant 0 : index
      %97 = vector.load %arg4[%c0_37, %c0_38] : memref<1x1xf32, #tpu.memory_space<vmem>>, vector<1x1xf32>
      %cst_39 = arith.constant 0.00333333341 : f32
      %98 = vector.broadcast %cst_39 : f32 to vector<1x1xf32>
      %99 = arith.mulf %97, %98 : vector<1x1xf32>
      %c0_40 = arith.constant 0 : index
      %c0_41 = arith.constant 0 : index
      %100 = vector.load %arg4[%c0_40, %c0_41] : memref<1x1xf32, #tpu.memory_space<vmem>>, vector<1x1xf32>
      tpu.vector_store %arg4[%c0_40, %c0_41], %99 {strides = array<i32>} : memref<1x1xf32, #tpu.memory_space<vmem>>, vector<1x1xf32>,
    } else {
    }
    return
  }
  func.func @transform_0(%arg0: i32) -> (i32, i32) {
    %c0_i32 = arith.constant 0 : i32
    %c0_i32_0 = arith.constant 0 : i32
    return %arg0, %c0_i32 : i32, i32
  }
  func.func @transform_1(%arg0: i32) -> (i32, i32) {
    %c0_i32 = arith.constant 0 : i32
    %c0_i32_0 = arith.constant 0 : i32
    %c0_i32_1 = arith.constant 0 : i32
    return %c0_i32, %c0_i32_0 : i32, i32
  }
  func.func @transform_2(%arg0: i32) -> (i32, i32) {
    %c0_i32 = arith.constant 0 : i32
    %c0_i32_0 = arith.constant 0 : i32
    return %arg0, %c0_i32 : i32, i32
  }
  func.func @transform_3(%arg0: i32) -> (i32, i32) {
    %c0_i32 = arith.constant 0 : i32
    %c0_i32_0 = arith.constant 0 : i32
    %c0_i32_1 = arith.constant 0 : i32
    return %c0_i32, %c0_i32_0 : i32, i32
  }
}

</mosaic_0001>

<bundles_post_ra>
// kernel: gasoftmax_loss.1
= control target key start
LH: loop header
LB: loop body
LE: loop exit
PB: predicated region body
PF: predicated region fallthrough
CT: control target
= control target key end

     0   :  { %8 = vsyncpa [#allocation4], 0  ;;  %s2031_s12 = smov 0   ;;  %s3591_s0 = inlined_call_operand.vmem [shape: f32[300,32], index: 0, kind: input, shape index: {}]   ;;  %s3592_s1 = inlined_call_operand.vmem [shape: f32[32,128], index: 1, kind: input, shape index: {}]   ;;  %s3593_s2 = inlined_call_operand.vmem [shape: s32[300,1], index: 2, kind: input, shape index: {}]   ;;  %s3594_s3 = inlined_call_operand.hbm [shape: f32[1,1], index: 3, kind: output, shape index: {}]  }
   0x1 LB: > { %s2037_s13 = sadd.s32 4294967295, %s2006_s12   ;;  %p1762_p0 = scmp.ge.s32.totalorder %s2006_s12, 1  ;;  %s2006_s12 = sphi %s2031_s12, %s14_s12  }
   0x2   : > { %p161_p1 = scmp.lt.s32.totalorder %s2006_s12, 4 }
   0x4   : > { %p162_p2 = pnand %p1762_p0, %p161_p1 }
   0x5   : > { %s1763_s14 = sshll.u32 (!%p162_p2), %s2037_s13, 4  ;;  %p1767_p4 = scmp.ne.s32.totalorder (!%p162_p2), %s2037_s13, 0 }
   0x6   : > { %165 = sbr.rel (%p162_p2) target bundleno = 845 (0x34d), region = 32  ;;  %p198_p3 = scmp.lt.s32.totalorder (!%p162_p2), %s1763_s14, 37 }
   0xb   : > { %s3668_s14 = smov (!%p198_p3, %s1763_s14), 37  ;;  %224 = sbr.rel (%p1767_p4) target bundleno = 63 (0x3f), region = 36 }
   0xc   : > { %s1764_s15 = sshll.u32 %s3668_s14, 3 }
   0xd   : > { %s2045_s18 = scalar_lea.vmem %s3591_s0, %s1764_s15  ;;  %s2050_s21 = scalar_lea.vmem %s3593_s2, %s1764_s15 }
  0x10   : > { %v225_v0 = vld [vmem:[%s3592_s1] sm:$0xff]  ;;  %v226_v1 = vld [vmem:[%s3592_s1 + $0x8] sm:$0xff]  ;;  %v227_v2 = vld [vmem:[%s3592_s1 + $0x10] sm:$0xff]  ;;  %vm261_vm0 = vcmask 0   ;;  %v2008_v14 = vmov 0.0  }
  0x11   : > { %v228_v3 = vld [vmem:[%s3592_s1 + $0x18] sm:$0xff]  ;;  %v229_v4 = vmul.f32 %v225_v0, %v225_v0  ;;  %v230_v5 = vmul.f32 %v226_v1, %v226_v1  ;;  %v231_v6 = vmul.f32 %v227_v2, %v227_v2  ;;  %262 = vst.msk [vmem:[#allocation3] sm:$0x1] %vm261_vm0, %v2008_v14 }
  0x12   : > { %v232_v7 = vmul.f32 %v228_v3, %v228_v3 }
  0x13   : > { %v233_v8 = vadd.f32 %v230_v5, %v229_v4 }
  0x15   : > { %v234_v9 = vadd.f32 %v233_v8, %v231_v6 }
  0x17   : > { %v235_v10 = vadd.f32 %v234_v9, %v232_v7 }
  0x19   : > { %v236_v11 = vrot.slane %v235_v10, 4 }
  0x1b   : > { %v237_v12 = vadd.f32 %v236_v11, %v235_v10 }
  0x1d   : > { %v238_v13 = vrot.slane %v237_v12, 2 }
  0x1f   : > { %v239_v15 = vadd.f32 %v238_v13, %v237_v12 }
  0x21   : > { %v240_v16 = vrot.slane %v239_v15, 1 }
  0x23   : > { %v241_v17 = vadd.f32 %v240_v16, %v239_v15 }
  0x25   : > { %v242_v18 = vmax.f32 %v241_v17, 1e-24 }
  0x27   : > { %1835 = vrsqrt.f32 %v242_v18  ;;  %vm249_vm1 = vweird.f32 %v242_v18 }
  0x2d   : > { %v1836_v19 = vpop.eup %1835 }
  0x2e   : > { %v244_v20 = vmul.f32 %v1836_v19, %v242_v18  ;;  %vm250_vm2 = vweird.f32 %v1836_v19 }
  0x2f   : > { %vm251_vm3 = vmor %vm249_vm1, %vm250_vm2 }
  0x30   : > { %v245_v21 = vmul.f32 %v1836_v19, %v244_v20 }
  0x32   : > { %v246_v22 = vmul.f32 0.5, %v245_v21 }
  0x34   : > { %v247_v23 = vsub.f32 1.5, %v246_v22 }
  0x36   : > { %v248_v24 = vmul.f32 %v1836_v19, %v247_v23 }
  0x38   : > { %v252_v25 = vsel %vm251_vm3, %v1836_v19, %v248_v24 }
  0x39   : > { %v253_v26 = vmul.f32 %v252_v25, %v225_v0  ;;  %v254_v27 = vmul.f32 %v252_v25, %v226_v1  ;;  %v255_v28 = vmul.f32 %v252_v25, %v227_v2  ;;  %v256_v29 = vmul.f32 %v252_v25, %v228_v3 }
  0x3b   : > { %257 = vst [vmem:[#allocation2 + $0x10] sm:$0xff] %v253_v26 }
  0x3c   : > { %258 = vst [vmem:[#allocation2] sm:$0xff] %v254_v27 }
  0x3d   : > { %259 = vst [vmem:[#allocation2 + $0x18] sm:$0xff] %v255_v28 }
  0x3e   : > { %260 = vst [vmem:[#allocation2 + $0x8] sm:$0xff] %v256_v29 }
  0x3f PF: > { %v2066_v30 = vld [vmem:[%s2045_s18 + $0x20] sm:$0xff]  ;;  %vm295_vm4 = vcmask 261120   ;;  %v2069_v31 = vld [vmem:[%s2045_s18 + $0x10] sm:$0xff]  ;;  %v2084_v37 = vld [vmem:[%s2045_s18 + $0x28] sm:$0xff]  ;;  %s1800_s30 = sshll.u32 %s2037_s13, 7  ;;  %p1801_p5 = scmp.ne.s32.totalorder %s2037_s13, 2 }
  0x40   : > { %v2072_v32 = vld [vmem:[%s2045_s18] sm:$0xff]  ;;  %v283_v33 = vmul.f32 %v2066_v30, %v2066_v30  ;;  %v281_v34 = vmul.f32 %v2069_v31, %v2069_v31  ;;  %v2090_v41 = vld [vmem:[%s2045_s18 + $0x8] sm:$0xff]  ;;  %v284_v43 = vmul.f32 %v2084_v37, %v2084_v37  ;;  %v2105_v49 = vld [vmem:[%s2045_s18 + $0x18] sm:$0xff] }
  0x41   : > { %v279_v35 = vmul.f32 %v2072_v32, %v2072_v32  ;;  %v2081_v36 = vld [vmem:[%s2045_s18 + $0x40] sm:$0xff]  ;;  %v280_v44 = vmul.f32 %v2090_v41, %v2090_v41  ;;  %v2108_v50 = vld [vmem:[%s2045_s18 + $0x48] sm:$0xff]  ;;  %v282_v52 = vmul.f32 %v2105_v49, %v2105_v49  ;;  %v2120_v57 = vld [vmem:[%s2045_s18 + $0x50] sm:$0xff] }
  0x42   : > { %v308_v38 = vsel %vm295_vm4, %v283_v33, 0.0  ;;  %v302_v39 = vsel %vm295_vm4, %v281_v34, 0.0  ;;  %v287_v42 = vmul.f32 %v2081_v36, %v2081_v36  ;;  %v311_v46 = vsel %vm295_vm4, %v284_v43, 0.0  ;;  %v2102_v48 = vld [vmem:[%s2045_s18 + $0x60] sm:$0xff]  ;;  %v2123_v58 = vld [vmem:[%s2045_s18 + $0x68] sm:$0xff]  ;;  %v2126_v59 = vld [vmem:[%s2045_s18 + $0x30] sm:$0xff] }
  0x43   : > { %v296_v40 = vsel %vm295_vm4, %v279_v35, 0.0  ;;  %309 = vadd.xlane.f32.xlu1 %v308_v38  ;;  %303 = vadd.xlane.f32.xlu2 %v302_v39  ;;  %v299_v47 = vsel %vm295_vm4, %v280_v44, 0.0  ;;  %v291_v51 = vmul.f32 %v2102_v48, %v2102_v48  ;;  %v288_v53 = vmul.f32 %v2108_v50, %v2108_v50  ;;  %v2138_v2 = vld [vmem:[%s2045_s18 + $0x58] sm:$0xff]  ;;  %v2141_v3 = vld [vmem:[%s2045_s18 + $0x70] sm:$0xff]  ;;  %v537_v16 = vld [vmem:[#allocation2] sm:$0xff] }
  0x44   : > { %297 = vadd.xlane.f32.xlu0 %v296_v40  ;;  %v320_v45 = vsel %vm295_vm4, %v287_v42, 0.0  ;;  %v305_v55 = vsel %vm295_vm4, %v282_v52, 0.0  ;;  %v289_v60 = vmul.f32 %v2120_v57, %v2120_v57  ;;  %v292_v61 = vmul.f32 %v2123_v58, %v2123_v58  ;;  %v2144_v4 = vld [vmem:[%s2045_s18 + $0x38] sm:$0xff]  ;;  %v536_v17 = vld [vmem:[#allocation2 + $0x10] sm:$0xff] }
  0x45   : > { %v332_v54 = vsel %vm295_vm4, %v291_v51, 0.0  ;;  %v323_v56 = vsel %vm295_vm4, %v288_v53, 0.0  ;;  %v285_v62 = vmul.f32 %v2126_v59, %v2126_v59  ;;  %v290_v5 = vmul.f32 %v2138_v2, %v2138_v2  ;;  %v2156_v11 = vld [vmem:[%s2045_s18 + $0x78] sm:$0xff]  ;;  %v539_v14 = vld [vmem:[#allocation2 + $0x8] sm:$0xff] }
  0x46   : > { %v326_v63 = vsel %vm295_vm4, %v289_v60, 0.0  ;;  %v335_v0 = vsel %vm295_vm4, %v292_v61, 0.0  ;;  %v293_v6 = vmul.f32 %v2141_v3, %v2141_v3  ;;  %v286_v7 = vmul.f32 %v2144_v4, %v2144_v4  ;;  %600 = vmatpush.msra.mxu0 %v539_v14  ;;  %1806 = vmatpush.msra.mxu1 %v539_v14  ;;  %v538_v15 = vld [vmem:[#allocation2 + $0x18] sm:$0xff] }
  0x47   : > { %v314_v1 = vsel %vm295_vm4, %v285_v62, 0.0  ;;  %v329_v8 = vsel %vm295_vm4, %v290_v5, 0.0  ;;  %v294_v12 = vmul.f32 %v2156_v11, %v2156_v11  ;;  %1807 = vmatpush.msra.mxu2 %v539_v14  ;;  %1808 = vmatpush.msra.mxu3 %v539_v14 }
  0x48   : > { %v338_v9 = vsel %vm295_vm4, %v293_v6, 0.0  ;;  %v317_v10 = vsel %vm295_vm4, %v286_v7, 0.0  ;;  %601 = vmatpush.msra.mxu0 %v538_v15  ;;  %1809 = vmatpush.msra.mxu1 %v538_v15 }
  0x49   : > { %v341_v13 = vsel %vm295_vm4, %v294_v12, 0.0  ;;  %1810 = vmatpush.msra.mxu2 %v538_v15  ;;  %1811 = vmatpush.msra.mxu3 %v538_v15 }
  0x4a   : > { %602 = vmatpush.msra.mxu0 %v537_v16  ;;  %1812 = vmatpush.msra.mxu1 %v537_v16 }
  0x4b   : > { %321 = vadd.xlane.f32.xlu1 %v320_v45  ;;  %312 = vadd.xlane.f32.xlu2 %v311_v46 }
  0x4c   : > { %300 = vadd.xlane.f32.xlu0 %v299_v47  ;;  %1813 = vmatpush.msra.mxu2 %v537_v16 }
  0x4d   : > { %1814 = vmatpush.msra.mxu3 %v537_v16  ;;  %603 = vmatpush.msra.mxu0 %v536_v17 }
  0x4e   : > { %1815 = vmatpush.msra.mxu1 %v536_v17  ;;  %1816 = vmatpush.msra.mxu2 %v536_v17 }
  0x4f   : > { %1817 = vmatpush.msra.mxu3 %v536_v17 }
  0x53   : > { %333 = vadd.xlane.f32.xlu1 %v332_v54  ;;  %306 = vadd.xlane.f32.xlu2 %v305_v55 }
  0x54   : > { %324 = vadd.xlane.f32.xlu0 %v323_v56 }
  0x5b   : > { %327 = vadd.xlane.f32.xlu1 %v326_v63  ;;  %336 = vadd.xlane.f32.xlu2 %v335_v0 }
  0x5c   : > { %315 = vadd.xlane.f32.xlu0 %v314_v1 }
  0x63   : > { %330 = vadd.xlane.f32.xlu1 %v329_v8  ;;  %339 = vadd.xlane.f32.xlu2 %v338_v9 }
  0x64   : > { %318 = vadd.xlane.f32.xlu0 %v317_v10 }
  0x6c   : > { %342 = vadd.xlane.f32.xlu0 %v341_v13 }
  0xb6   : > { %v310_v18 = vpop.xlane.xlu1 %309  ;;  %v304_v19 = vpop.xlane.xlu2 %303 }
  0xb7   : > { %v348_v20 = vmax.f32 %v310_v18, 1e-24  ;;  %v2161_v21 = vmax.f32 %v304_v19, 1e-24  ;;  %v298_v22 = vpop.xlane.xlu0 %297 }
  0xb8   : > { %v344_v23 = vmax.f32 %v298_v22, 1e-24 }
  0xb9   : > { %1840 = vrsqrt.f32 %v348_v20  ;;  %vm406_vm8 = vweird.f32 %v348_v20  ;;  %vm386_vm11 = vweird.f32 %v2161_v21 }
  0xba   : > { %1842 = vrsqrt.f32 %v2161_v21  ;;  %vm366_vm5 = vweird.f32 %v344_v23 }
  0xbb   : > { %1844 = vrsqrt.f32 %v344_v23 }
  0xbe   : > { %v322_v24 = vpop.xlane.xlu1 %321  ;;  %v313_v25 = vpop.xlane.xlu2 %312 }
  0xbf   : > { %v2164_v26 = vpop.eup %1840  ;;  %v2166_v27 = vmax.f32 %v322_v24, 1e-24  ;;  %v2168_v28 = vmax.f32 %v313_v25, 1e-24  ;;  %v301_v29 = vpop.xlane.xlu0 %300 }
  0xc0   : > { %v2170_v33 = vpop.eup %1842  ;;  %v401_v34 = vmul.f32 %v2164_v26, %v348_v20  ;;  %v2173_v35 = vmax.f32 %v301_v29, 1e-24  ;;  %vm407_vm7 = vweird.f32 %v2164_v26 }
  0xc1   : > { %v1845_v38 = vpop.eup %1844  ;;  %v381_v39 = vmul.f32 %v2170_v33, %v2161_v21  ;;  %1846 = vrsqrt.f32 %v2166_v27  ;;  %vm416_vm10 = vweird.f32 %v2168_v28  ;;  %vm387_vm12 = vweird.f32 %v2170_v33  ;;  %vm408_vm13 = vmor %vm406_vm8, %vm407_vm7 }
  0xc2   : > { %v402_v40 = vmul.f32 %v2164_v26, %v401_v34  ;;  %v361_v42 = vmul.f32 %v1845_v38, %v344_v23  ;;  %1848 = vrsqrt.f32 %v2168_v28  ;;  %vm367_vm6 = vweird.f32 %v1845_v38 }
  0xc3   : > { %1850 = vrsqrt.f32 %v2173_v35  ;;  %v382_v45 = vmul.f32 %v2170_v33, %v381_v39  ;;  %vm2206_vm9 = vmor %vm366_vm5, %vm367_vm6  ;;  %vm446_vm14 = vweird.f32 %v2166_v27  ;;  %vm376_vm0 = vweird.f32 %v2173_v35 }
  0xc4   : > { %v403_v43 = vmul.f32 0.5, %v402_v40  ;;  %v362_v44 = vmul.f32 %v1845_v38, %v361_v42 }
  0xc5   : > { %v383_v1 = vmul.f32 0.5, %v382_v45 }
  0xc6   : > { %v363_v46 = vmul.f32 0.5, %v362_v44  ;;  %v334_v47 = vpop.xlane.xlu1 %333  ;;  %v307_v51 = vpop.xlane.xlu2 %306  ;;  %v404_v60 = vsub.f32 1.5, %v403_v43 }
  0xc7   : > { %v2182_v52 = vpop.eup %1846  ;;  %v2184_v53 = vmax.f32 %v334_v47, 1e-24  ;;  %v2186_v54 = vmax.f32 %v307_v51, 1e-24  ;;  %v325_v55 = vpop.xlane.xlu0 %324  ;;  %v384_v15 = vsub.f32 1.5, %v383_v1 }
  0xc8   : > { %v2188_v56 = vpop.eup %1848  ;;  %v364_v61 = vsub.f32 1.5, %v363_v46  ;;  %v441_v62 = vmul.f32 %v2182_v52, %v2166_v27  ;;  %v2192_v63 = vmax.f32 %v325_v55, 1e-24  ;;  %v405_v14 = vmul.f32 %v2164_v26, %v404_v60 }
  0xc9   : > { %v2194_v0 = vpop.eup %1850  ;;  %v411_v5 = vmul.f32 %v2188_v56, %v2168_v28  ;;  %1852 = vrsqrt.f32 %v2184_v53  ;;  %vm417_vm15 = vweird.f32 %v2188_v56  ;;  %vm447_vm2 = vweird.f32 %v2182_v52 }
  0xca   : > { %v442_v6 = vmul.f32 %v2182_v52, %v441_v62  ;;  %v371_v7 = vmul.f32 %v2194_v0, %v2173_v35  ;;  %1854 = vrsqrt.f32 %v2186_v54  ;;  %v365_v13 = vmul.f32 %v1845_v38, %v364_v61  ;;  %vm2264_vm6 = vmor %vm416_vm10, %vm417_vm15 }
  0xcb   : > { %v412_v9 = vmul.f32 %v2188_v56, %v411_v5  ;;  %1856 = vrsqrt.f32 %v2192_v63  ;;  %vm377_vm1 = vweird.f32 %v2194_v0  ;;  %v409_v19 = vsel %vm408_vm13, %v2164_v26, %v405_v14  ;;  %vm2288_vm15 = vmor %vm446_vm14, %vm447_vm2 }
  0xcc   : > { %v443_v10 = vmul.f32 0.5, %v442_v6  ;;  %v372_v12 = vmul.f32 %v2194_v0, %v371_v7  ;;  %v369_v18 = vsel %vm2206_vm9, %v1845_v38, %v365_v13  ;;  %v524_v29 = vmul.f32 %v409_v19, %v2066_v30  ;;  %vm2251_vm5 = vmor %vm376_vm0, %vm377_vm1 }
  0xcd   : > { %v413_v16 = vmul.f32 0.5, %v412_v9  ;;  %v520_v25 = vmul.f32 %v369_v18, %v2072_v32  ;;  %vm456_vm3 = vweird.f32 %v2192_v63  ;;  %v385_v47 = vmul.f32 %v2170_v33, %v384_v15  ;;  %vm2302_vm0 = vmor %vm386_vm11, %vm387_vm12 }
  0xce   : > { %v373_v17 = vmul.f32 0.5, %v372_v12  ;;  %v328_v20 = vpop.xlane.xlu1 %327  ;;  %v337_v22 = vpop.xlane.xlu2 %336  ;;  %v444_v24 = vsub.f32 1.5, %v443_v10  ;;  %1772 = vmatmul.msk.f32.vlgmr.msra.gmra.mxu1 %vm295_vm4, %v524_v29  ;;  %vm486_vm8 = vweird.f32 %v2184_v53  ;;  %vm396_vm9 = vweird.f32 %v2186_v54 }
  0xcf   : > { %v2226_v23 = vpop.eup %1852  ;;  %v2230_v34 = vmax.f32 %v328_v20, 1e-24  ;;  %v316_v39 = vpop.xlane.xlu0 %315  ;;  %v414_v42 = vsub.f32 1.5, %v413_v16  ;;  %v2236_v26 = vmax.f32 %v337_v22, 1e-24  ;;  %1768 = vmatmul.msk.f32.vlgmr.msra.gmra.mxu0 %vm295_vm4, %v520_v25  ;;  %v389_v22 = vsel %vm2302_vm0, %v2170_v33, %v385_v47 }
  0xd0   : > { %v2232_v40 = vpop.eup %1854  ;;  %v374_v43 = vsub.f32 1.5, %v373_v17  ;;  %v481_v38 = vmul.f32 %v2226_v23, %v2184_v53  ;;  %vm487_vm7 = vweird.f32 %v2226_v23  ;;  %v2270_v55 = vmax.f32 %v316_v39, 1e-24 }
  0xd1   : > { %v2238_v44 = vpop.eup %1856  ;;  %v391_v32 = vmul.f32 %v2232_v40, %v2186_v54  ;;  %1858 = vrsqrt.f32 %v2230_v34  ;;  %v415_v28 = vmul.f32 %v2188_v56, %v414_v42  ;;  %v445_v1 = vmul.f32 %v2182_v52, %v444_v24 }
  0xd2   : > { %v482_v45 = vmul.f32 %v2226_v23, %v481_v38  ;;  %v451_v46 = vmul.f32 %v2238_v44, %v2192_v63  ;;  %1860 = vrsqrt.f32 %v2236_v26  ;;  %v375_v60 = vmul.f32 %v2194_v0, %v374_v43 }
  0xd3   : > { %v392_v35 = vmul.f32 %v2232_v40, %v391_v32  ;;  %vm397_vm10 = vweird.f32 %v2232_v40  ;;  %vm466_vm13 = vweird.f32 %v2230_v34  ;;  %1862 = vrsqrt.f32 %v2270_v55 }
  0xd4   : > { %v483_v61 = vmul.f32 0.5, %v482_v45  ;;  %v452_v62 = vmul.f32 %v2238_v44, %v451_v46  ;;  %v379_v5 = vsel %vm2251_vm5, %v2194_v0, %v375_v60  ;;  %v419_v10 = vsel %vm2264_vm6, %v2188_v56, %v415_v28  ;;  %vm2369_vm6 = vmor %vm396_vm9, %vm397_vm10 }
  0xd5   : > { %v393_v7 = vmul.f32 0.5, %v392_v35  ;;  %v521_v9 = vmul.f32 %v379_v5, %v2090_v41  ;;  %v525_v14 = vmul.f32 %v419_v10, %v2084_v37  ;;  %v449_v41 = vsel %vm2288_vm15, %v2182_v52, %v445_v1  ;;  %v1197_v1 = vld [vmem:[%s2050_s21] sm:$0xff] }
  0xd6   : > { %v453_v8 = vmul.f32 0.5, %v452_v62  ;;  %v331_v12 = vpop.xlane.xlu1 %330  ;;  %v484_v0 = vsub.f32 1.5, %v483_v61  ;;  %v340_v56 = vpop.xlane.xlu2 %339  ;;  %vm457_vm14 = vweird.f32 %v2238_v44  ;;  %v528_v19 = vmul.f32 %v449_v41, %v2081_v36 }
  0xd7   : > { %v2296_v13 = vpop.eup %1858  ;;  %v2310_v15 = vmax.f32 %v331_v12, 1e-24  ;;  %v319_v16 = vpop.xlane.xlu0 %318  ;;  %vm496_vm11 = vweird.f32 %v2236_v26  ;;  %vm426_vm12 = vweird.f32 %v2270_v55  ;;  %1769 = vmatmul.msk.f32.gmra.mxu0 %vm295_vm4, %v521_v9  ;;  %1773 = vmatmul.msk.f32.gmra.mxu1 %vm295_vm4, %v525_v14  ;;  %v2327_v20 = vmax.f32 %v340_v56, 1e-24  ;;  %vm2340_vm1 = vmor %vm456_vm3, %vm457_vm14  ;;  %v1198_v12 = vld [vmem:[%s2050_s21 + $0x8] sm:$0xff] }
  0xd8   : > { %v2312_v17 = vpop.eup %1860  ;;  %v454_v18 = vsub.f32 1.5, %v453_v8  ;;  %v461_v21 = vmul.f32 %v2296_v13, %v2230_v34  ;;  %1776 = vmatmul.msk.f32.vlgmr.msra.gmra.mxu2 %vm295_vm4, %v528_v19  ;;  %v2329_v36 = vmax.f32 %v319_v16, 1e-24  ;;  %v394_v25 = vsub.f32 1.5, %v393_v7  ;;  %vm488_vm3 = vmor %vm486_vm8, %vm487_vm7 }
  0xd9   : > { %v491_v37 = vmul.f32 %v2312_v17, %v2236_v26  ;;  %1864 = vrsqrt.f32 %v2310_v15  ;;  %v2334_v24 = vpop.eup %1862  ;;  %v485_v43 = vmul.f32 %v2226_v23, %v484_v0  ;;  %vm467_vm2 = vweird.f32 %v2296_v13 }
  0xda   : > { %v462_v52 = vmul.f32 %v2296_v13, %v461_v21  ;;  %v455_v42 = vmul.f32 %v2238_v44, %v454_v18  ;;  %v421_v33 = vmul.f32 %v2334_v24, %v2270_v55  ;;  %1866 = vrsqrt.f32 %v2327_v20  ;;  %vm2380_vm7 = vmor %vm466_vm13, %vm467_vm2 }
  0xdb   : > { %v492_v39 = vmul.f32 %v2312_v17, %v491_v37  ;;  %vm497_vm5 = vweird.f32 %v2312_v17  ;;  %1868 = vrsqrt.f32 %v2329_v36  ;;  %v522_v32 = vmul.f32 %v389_v22, %v2069_v31 }
  0xdc   : > { %v463_v38 = vmul.f32 0.5, %v462_v52  ;;  %v422_v45 = vmul.f32 %v2334_v24, %v421_v33  ;;  %v459_v46 = vsel %vm2340_vm1, %v2238_v44, %v455_v42  ;;  %v489_v47 = vsel %vm488_vm3, %v2226_v23, %v485_v43  ;;  %vm2401_vm9 = vmor %vm496_vm11, %vm497_vm5  ;;  %v1204_v23 = vld [vmem:[%s2050_s21 + $0x38] sm:$0xff] }
  0xdd   : > { %v493_v63 = vmul.f32 0.5, %v492_v39  ;;  %v529_v35 = vmul.f32 %v459_v46, %v2108_v50  ;;  %v532_v60 = vmul.f32 %v489_v47, %v2102_v48  ;;  %v395_v44 = vmul.f32 %v2232_v40, %v394_v25  ;;  %v1199_v48 = vld [vmem:[%s2050_s21 + $0x10] sm:$0xff]  ;;  %v1206_v25 = vld [vmem:[%s2050_s21 + $0x48] sm:$0xff] }
  0xde   : > { %v464_v30 = vsub.f32 1.5, %v463_v38  ;;  %v423_v54 = vmul.f32 0.5, %v422_v45  ;;  %vm427_vm8 = vweird.f32 %v2334_v24  ;;  %v2009_v10 = vmov 0  }
  0xdf   : > { %v2363_v51 = vpop.eup %1864  ;;  %v494_v31 = vsub.f32 1.5, %v493_v63  ;;  %v343_v61 = vpop.xlane.xlu0 %342  ;;  %1770 = vmatmul.msk.f32.gmra.mxu0 %vm295_vm4, %v522_v32  ;;  %1780 = vmatmul.msk.f32.vlgmr.msra.gmra.mxu3 %vm295_vm4, %v532_v60  ;;  %v399_v9 = vsel %vm2369_vm6, %v2232_v40, %v395_v44  ;;  %vm2416_vm10 = vmor %vm426_vm12, %vm427_vm8  ;;  %vm476_vm13 = vweird.f32 %v2310_v15  ;;  %vm506_vm0 = vweird.f32 %v2327_v20  ;;  %v1203_v60 = vld [vmem:[%s2050_s21 + $0x30] sm:$0xff]  ;;  %v1205_v44 = vld [vmem:[%s2050_s21 + $0x40] sm:$0xff] }
  0xe0   : > { %v471_v62 = vmul.f32 %v2363_v51, %v2310_v15  ;;  %v2387_v50 = vmax.f32 %v343_v61, 1e-24  ;;  %v465_v34 = vmul.f32 %v2296_v13, %v464_v30  ;;  %v2395_v5 = vpop.eup %1866  ;;  %v424_v7 = vsub.f32 1.5, %v423_v54  ;;  %1777 = vmatmul.msk.f32.gmra.mxu2 %vm295_vm4, %v529_v35  ;;  %1839 = vset.pattern.permute.xlu0 %v2009_v10  ;;  %v1201_v15 = vld [vmem:[%s2050_s21 + $0x20] sm:$0xff]  ;;  %v1212_v61 = vld [vmem:[%s2050_s21 + $0x78] sm:$0xff] }
  0xe1   : > { %v495_v28 = vmul.f32 %v2312_v17, %v494_v31  ;;  %v1869_v27 = vpop.eup %1868  ;;  %v501_v0 = vmul.f32 %v2395_v5, %v2327_v20  ;;  %1837 = vset.pattern.permute.xlu1 %v2009_v10  ;;  %1222 = vperm.xlu0 %1839, %v1199_v48   ;;  %vm477_vm15 = vweird.f32 %v2363_v51  ;;  %v523_v16 = vmul.f32 %v399_v9, %v2105_v49  ;;  %v1209_v31 = vld [vmem:[%s2050_s21 + $0x60] sm:$0xff]  ;;  %v1208_v54 = vld [vmem:[%s2050_s21 + $0x58] sm:$0xff]  ;;  %v1210_v48 = vld [vmem:[%s2050_s21 + $0x68] sm:$0xff] }
  0xe2   : > { %v472_v8 = vmul.f32 %v2363_v51, %v471_v62  ;;  %1870 = vrsqrt.f32 %v2387_v50  ;;  %v469_v40 = vsel %vm2380_vm7, %v2296_v13, %v465_v34  ;;  %v431_v55 = vmul.f32 %v1869_v27, %v2329_v36  ;;  %1216 = vperm.xlu1 %1837, %v1197_v1   ;;  %1838 = vset.pattern.permute.xlu2 %v2009_v10  ;;  %vm2446_vm11 = vmor %vm476_vm13, %vm477_vm15  ;;  %v1207_v62 = vld [vmem:[%s2050_s21 + $0x50] sm:$0xff] }
  0xe3   : > { %v425_v41 = vmul.f32 %v2334_v24, %v424_v7  ;;  %v502_v56 = vmul.f32 %v2395_v5, %v501_v0  ;;  %v530_v18 = vmul.f32 %v469_v40, %v2120_v57  ;;  %v499_v13 = vsel %vm2401_vm9, %v2312_v17, %v495_v28  ;;  %1219 = vperm.xlu2 %1838, %v1198_v12  }
  0xe4   : > { %v473_v14 = vmul.f32 0.5, %v472_v8  ;;  %v432_v19 = vmul.f32 %v1869_v27, %v431_v55  ;;  %v533_v52 = vmul.f32 %v499_v13, %v2123_v58  ;;  %vm507_vm14 = vweird.f32 %v2395_v5 }
  0xe5   : > { %v429_v37 = vsel %vm2416_vm10, %v2334_v24, %v425_v41  ;;  %v503_v22 = vmul.f32 0.5, %v502_v56  ;;  %vm436_vm12 = vweird.f32 %v2329_v36  ;;  %vm437_vm1 = vweird.f32 %v1869_v27  ;;  %vm2459_vm2 = vmor %vm506_vm0, %vm507_vm14  ;;  %v1200_v36 = vld [vmem:[%s2050_s21 + $0x18] sm:$0xff] }
  0xe6   : > { %v474_v21 = vsub.f32 1.5, %v473_v14  ;;  %v526_v49 = vmul.f32 %v429_v37, %v2126_v59  ;;  %v433_v24 = vmul.f32 0.5, %v432_v19  ;;  %vm2466_vm3 = vmor %vm436_vm12, %vm437_vm1  ;;  %vm516_vm5 = vweird.f32 %v2387_v50 }
  0xe7   : > { %v504_v29 = vsub.f32 1.5, %v503_v22  ;;  %1771 = vmatmul.msk.f32.gmra.mxu0 %vm295_vm4, %v523_v16  ;;  %1781 = vmatmul.msk.f32.gmra.mxu3 %vm295_vm4, %v533_v52 }
  0xe8   : > { %v1871_v57 = vpop.eup %1870  ;;  %v475_v58 = vmul.f32 %v2363_v51, %v474_v21  ;;  %1774 = vmatmul.msk.f32.gmra.mxu1 %vm295_vm4, %v526_v49  ;;  %v434_v42 = vsub.f32 1.5, %v433_v24  ;;  %1778 = vmatmul.msk.f32.gmra.mxu2 %vm295_vm4, %v530_v18 }
  0xe9   : > { %v511_v59 = vmul.f32 %v1871_v57, %v2387_v50  ;;  %v505_v20 = vmul.f32 %v2395_v5, %v504_v29  ;;  %1243 = vperm.xlu0 %1839, %v1206_v25   ;;  %vm517_vm6 = vweird.f32 %v1871_v57  ;;  %v1211_v50 = vld [vmem:[%s2050_s21 + $0x70] sm:$0xff] }
  0xea   : > { %v479_v33 = vsel %vm2446_vm11, %v2363_v51, %v475_v58  ;;  %v435_v63 = vmul.f32 %v1869_v27, %v434_v42  ;;  %1228 = vperm.xlu1 %1837, %v1201_v15   ;;  %vm518_vm7 = vmor %vm516_vm5, %vm517_vm6 }
  0xeb   : > { %v512_v38 = vmul.f32 %v1871_v57, %v511_v59  ;;  %v509_v30 = vsel %vm2459_vm2, %v2395_v5, %v505_v20  ;;  %1225 = vperm.xlu2 %1838, %v1200_v36   ;;  %v531_v46 = vmul.f32 %v479_v33, %v2138_v2  ;;  %v1202_v2 = vld [vmem:[%s2050_s21 + $0x28] sm:$0xff] }
  0xec   : > { %v439_v45 = vsel %vm2466_vm3, %v1869_v27, %v435_v63  ;;  %v534_v47 = vmul.f32 %v509_v30, %v2141_v3 }
  0xed   : > { %v513_v32 = vmul.f32 0.5, %v512_v38  ;;  %v527_v53 = vmul.f32 %v439_v45, %v2144_v4 }
  0xef   : > { %v514_v51 = vsub.f32 1.5, %v513_v32  ;;  %1782 = vmatmul.msk.f32.gmra.mxu3 %vm295_vm4, %v534_v47 }
  0xf0   : > { %1775 = vmatmul.msk.f32.gmra.mxu1 %vm295_vm4, %v527_v53  ;;  %1779 = vmatmul.msk.f32.gmra.mxu2 %vm295_vm4, %v531_v46 }
  0xf1   : > { %v515_v35 = vmul.f32 %v1871_v57, %v514_v51  ;;  %1252 = vperm.xlu0 %1839, %v1209_v31  }
  0xf2   : > { %1234 = vperm.xlu1 %1837, %v1203_v60  }
  0xf3   : > { %v519_v3 = vsel %vm518_vm7, %v1871_v57, %v515_v35  ;;  %1231 = vperm.xlu2 %1838, %v1202_v2  }
  0xf4   : > { %v535_v4 = vmul.f32 %v519_v3, %v2156_v11 }
  0xf7   : > { %1783 = vmatmul.msk.f32.gmra.mxu3 %vm295_vm4, %v535_v4 }
  0xf9   : > { %1261 = vperm.xlu0 %1839, %v1212_v61  }
  0xfa   : > { %1240 = vperm.xlu1 %1837, %v1205_v44  }
  0xfb   : > { %1237 = vperm.xlu2 %1838, %v1204_v23  }
 0x102   : > { %1249 = vperm.xlu1 %1837, %v1208_v54  }
 0x103   : > { %1246 = vperm.xlu2 %1838, %v1207_v62  }
 0x10a   : > { %1258 = vperm.xlu1 %1837, %v1211_v50  }
 0x10b   : > { %1255 = vperm.xlu2 %1838, %v1210_v48  }
 0x14b   : > { %v2500_v28 = vpop.f32.mrf.mxu1 }
 0x14c   : > { %v2498_v34 = vpop.f32.mrf.mxu0  ;;  %v1788_v1 = vclamps-f32 %v2500_v28, 0.99999 }
 0x14d   : > { %v1784_v11 = vclamps-f32 %v2498_v34, 0.99999 }
 0x14e   : > { %v2510_v6 = vand.u32 2147483647, %v1788_v1  ;;  %vm2688_vm11 = vcmp.ge.f32.partialorder %v1788_v1, 0.0 }
 0x14f   : > { %v2506_v5 = vand.u32 2147483647, %v1784_v11  ;;  %vm2651_vm0 = vcmp.ge.f32.partialorder %v1784_v11, 0.0 }
 0x150   : > { %v705_v8 = vmul.f32 -0.0012624911, %v2510_v6  ;;  %v2531_v18 = vsub.f32 1.0, %v2510_v6 }
 0x151   : > { %v701_v7 = vmul.f32 -0.0012624911, %v2506_v5  ;;  %v2515_v10 = vsub.f32 1.0, %v2506_v5 }
 0x152   : > { %v721_v12 = vadd.f32 0.00667009, %v705_v8  ;;  %vm996_vm9 = vcmp.eq.f32.partialorder %v2531_v18, inf  ;;  %vm998_vm10 = vcmp.eq.f32.partialorder %v2531_v18, 0.0 }
 0x153   : > { %v717_v9 = vadd.f32 0.00667009, %v701_v7  ;;  %1872 = vrsqrt.f32 %v2515_v10  ;;  %vm948_vm4 = vcmp.eq.f32.partialorder %v2515_v10, inf  ;;  %vm950_vm8 = vcmp.eq.f32.partialorder %v2515_v10, 0.0 }
 0x154   : > { %v2517_v27 = vpop.f32.mrf.mxu0  ;;  %v2519_v26 = vpop.f32.mrf.mxu1  ;;  %v737_v14 = vmul.f32 %v721_v12, %v2510_v6  ;;  %1874 = vrsqrt.f32 %v2531_v18 }
 0x155   : > { %v733_v0 = vmul.f32 %v717_v9, %v2506_v5  ;;  %v1785_v40 = vclamps-f32 %v2517_v27, 0.99999  ;;  %v1789_v55 = vclamps-f32 %v2519_v26, 0.99999 }
 0x156   : > { %v753_v16 = vadd.f32 -0.017088126, %v737_v14 }
 0x157   : > { %v749_v41 = vadd.f32 -0.017088126, %v733_v0  ;;  %v2527_v56 = vand.u32 2147483647, %v1785_v40  ;;  %v2537_v19 = vand.u32 2147483647, %v1789_v55 }
 0x158   : > { %v769_v37 = vmul.f32 %v753_v16, %v2510_v6  ;;  %vm2705_vm12 = vcmp.ge.f32.partialorder %v1785_v40, 0.0 }
 0x159   : > { %v702_v13 = vmul.f32 -0.0012624911, %v2527_v56  ;;  %v765_v21 = vmul.f32 %v749_v41, %v2506_v5  ;;  %v1873_v49 = vpop.eup %1872  ;;  %v2543_v17 = vsub.f32 1.0, %v2527_v56  ;;  %v706_v24 = vmul.f32 -0.0012624911, %v2537_v19 }
 0x15a   : > { %v785_v58 = vadd.f32 0.03089188, %v769_v37  ;;  %v942_v29 = vmul.f32 %v1873_v49, %v2515_v10  ;;  %v1875_v59 = vpop.eup %1874  ;;  %v2560_v47 = vsub.f32 1.0, %v2537_v19 }
 0x15b   : > { %v718_v52 = vadd.f32 0.00667009, %v702_v13  ;;  %v781_v57 = vadd.f32 0.03089188, %v765_v21  ;;  %1876 = vrsqrt.f32 %v2543_v17  ;;  %v722_v39 = vadd.f32 0.00667009, %v706_v24  ;;  %v2553_v63 = vpop.f32.mrf.mxu2 }
 0x15c   : > { %v801_v42 = vmul.f32 %v785_v58, %v2510_v6  ;;  %v943_v43 = vmul.f32 %v1873_v49, %v942_v29  ;;  %v990_v38 = vmul.f32 %v1875_v59, %v2531_v18  ;;  %v2555_v30 = vpop.f32.mrf.mxu0  ;;  %v1792_v31 = vclamps-f32 %v2553_v63, 0.99999 }
 0x15d   : > { %v734_v22 = vmul.f32 %v718_v52, %v2527_v56  ;;  %v797_v15 = vmul.f32 %v781_v57, %v2506_v5  ;;  %v738_v20 = vmul.f32 %v722_v39, %v2537_v19  ;;  %v1786_v2 = vclamps-f32 %v2555_v30, 0.99999 }
 0x15e   : > { %v817_v32 = vadd.f32 -0.050174303, %v801_v42  ;;  %v944_v51 = vmul.f32 0.5, %v943_v43  ;;  %v991_v53 = vmul.f32 %v1875_v59, %v990_v38  ;;  %1878 = vrsqrt.f32 %v2560_v47 }
 0x15f   : > { %v750_v25 = vadd.f32 -0.017088126, %v734_v22  ;;  %v813_v33 = vadd.f32 -0.050174303, %v797_v15  ;;  %v754_v60 = vadd.f32 -0.017088126, %v738_v20 }
 0x160   : > { %v833_v3 = vmul.f32 %v817_v32, %v2510_v6  ;;  %v2572_v44 = vand.u32 2147483647, %v1792_v31  ;;  %v945_v23 = vsub.f32 1.5, %v944_v51  ;;  %v992_v54 = vmul.f32 0.5, %v991_v53 }
 0x161   : > { %v766_v36 = vmul.f32 %v750_v25, %v2527_v56  ;;  %v2557_v45 = vpop.eup %1876  ;;  %v829_v35 = vmul.f32 %v813_v33, %v2506_v5  ;;  %v2576_v62 = vand.u32 2147483647, %v1786_v2  ;;  %v770_v48 = vmul.f32 %v754_v60, %v2537_v19 }
 0x162   : > { %v954_v4 = vmul.f32 %v2557_v45, %v2543_v17  ;;  %v709_v7 = vmul.f32 -0.0012624911, %v2572_v44  ;;  %v849_v8 = vadd.f32 0.08897899, %v833_v3  ;;  %v946_v14 = vmul.f32 %v1873_v49, %v945_v23 }
 0x163   : > { %v782_v46 = vadd.f32 0.03089188, %v766_v36  ;;  %v845_v50 = vadd.f32 0.08897899, %v829_v35  ;;  %v993_v41 = vsub.f32 1.5, %v992_v54  ;;  %v2588_v24 = vsub.f32 1.0, %v2572_v44  ;;  %v2604_v53 = vpop.f32.mrf.mxu2 }
 0x164   : > { %v955_v9 = vmul.f32 %v2557_v45, %v954_v4  ;;  %v725_v0 = vadd.f32 0.00667009, %v709_v7  ;;  %v703_v16 = vmul.f32 -0.0012624911, %v2576_v62  ;;  %v2582_v13 = vpop.eup %1878  ;;  %v786_v37 = vadd.f32 0.03089188, %v770_v48 }
 0x165   : > { %v798_v61 = vmul.f32 %v782_v46, %v2527_v56  ;;  %v861_v21 = vmul.f32 %v845_v50, %v2506_v5  ;;  %v865_v22 = vmul.f32 %v849_v8, %v2510_v6  ;;  %v947_v25 = vmul.f32 %v946_v14, %v2515_v10  ;;  %v2625_v14 = vpop.f32.mrf.mxu3 }
 0x166   : > { %v741_v52 = vmul.f32 %v725_v0, %v2572_v44  ;;  %v956_v57 = vmul.f32 0.5, %v955_v9  ;;  %v994_v29 = vmul.f32 %v1875_v59, %v993_v41  ;;  %v1002_v15 = vmul.f32 %v2582_v13, %v2560_v47 }
 0x167   : > { %v814_v12 = vadd.f32 -0.050174303, %v798_v61  ;;  %v719_v39 = vadd.f32 0.00667009, %v703_v16  ;;  %v877_v42 = vadd.f32 -0.2145988, %v861_v21  ;;  %v802_v36 = vmul.f32 %v786_v37, %v2537_v19 }
 0x168   : > { %v757_v58 = vadd.f32 -0.017088126, %v741_v52  ;;  %v2599_v38 = vsub.f32 1.0, %v2576_v62  ;;  %v881_v33 = vadd.f32 -0.2145988, %v865_v22  ;;  %v957_v20 = vsub.f32 1.5, %v956_v57 }
 0x169   : > { %v830_v49 = vmul.f32 %v814_v12, %v2527_v56  ;;  %1880 = vrsqrt.f32 %v2588_v24  ;;  %v735_v32 = vmul.f32 %v719_v39, %v2576_v62  ;;  %v3595_v59 = vlaneseq }
 0x16a   : > { %v773_v43 = vmul.f32 %v757_v58, %v2572_v44  ;;  %1882 = vrsqrt.f32 %v2599_v38  ;;  %v951_v35 = vand.u32 2147483648, %v2515_v10  ;;  %v995_v60 = vmul.f32 %v994_v29, %v2531_v18 }
 0x16b   : > { %v846_v46 = vadd.f32 0.08897899, %v830_v49  ;;  %v751_v3 = vadd.f32 -0.017088126, %v735_v32  ;;  %v893_v4 = vmul.f32 %v877_v42, %v2506_v5  ;;  %v949_v61 = vsel %vm948_vm4, %v2515_v10, %v947_v25 }
 0x16c   : > { %v789_v51 = vadd.f32 0.03089188, %v773_v43  ;;  %v818_v23 = vadd.f32 -0.050174303, %v802_v36  ;;  %v1003_v54 = vmul.f32 %v2582_v13, %v1002_v15  ;;  %v897_v50 = vmul.f32 %v881_v33, %v2510_v6 }
 0x16d   : > { %v958_v48 = vmul.f32 %v2557_v45, %v957_v20  ;;  %v767_v7 = vmul.f32 %v751_v3, %v2576_v62  ;;  %v1793_v8 = vclamps-f32 %v2604_v53, 0.99999  ;;  %v999_v9 = vand.u32 2147483648, %v2531_v18 }
 0x16e   : > { %v862_v5 = vmul.f32 %v846_v46, %v2527_v56  ;;  %v2622_v12 = vand.u32 127, %v3595_v59  ;;  %v805_v0 = vmul.f32 %v789_v51, %v2572_v44  ;;  %v952_v6 = vsel %vm950_vm8, %v951_v35, %v949_v61 }
 0x16f   : > { %v2627_v41 = vpop.eup %1880  ;;  %v997_v45 = vsel %vm996_vm9, %v2531_v18, %v995_v60  ;;  %vm960_vm13 = vcmp.eq.f32.partialorder %v2543_v17, inf  ;;  %v783_v16 = vadd.f32 0.03089188, %v767_v7  ;;  %v909_v37 = vadd.f32 1.5707963, %v893_v4 }
 0x170   : > { %v2635_v21 = vpop.eup %1882  ;;  %vm962_vm15 = vcmp.eq.f32.partialorder %v2543_v17, 0.0  ;;  %v834_v52 = vmul.f32 %v818_v23, %v2537_v19  ;;  %v1004_v22 = vmul.f32 0.5, %v1003_v54  ;;  %v2641_v57 = vand.u32 2147483647, %v1793_v8 }
 0x171   : > { %v913_v10 = vadd.f32 1.5707963, %v897_v50  ;;  %v959_v49 = vmul.f32 %v958_v48, %v2543_v17  ;;  %v799_v58 = vmul.f32 %v783_v16, %v2576_v62  ;;  %v1796_v25 = vclamps-f32 %v2625_v14, 0.99999 }
 0x172   : > { %v878_v29 = vadd.f32 -0.2145988, %v862_v5  ;;  %v821_v15 = vadd.f32 -0.050174303, %v805_v0  ;;  %v1038_v39 = vmul.f32 %v2627_v41, %v2588_v24  ;;  %v710_v42 = vmul.f32 -0.0012624911, %v2641_v57 }
 0x173   : > { %v815_v43 = vadd.f32 -0.050174303, %v799_v58  ;;  %v966_v33 = vmul.f32 %v2635_v21, %v2599_v38  ;;  %v2658_v20 = vsub.f32 1.0, %v2641_v57  ;;  %v2662_v32 = vand.u32 2147483647, %v1796_v25 }
 0x174   : > { %v1133_v46 = vmul.f32 %v952_v6, %v909_v37  ;;  %v850_v51 = vadd.f32 0.08897899, %v834_v52  ;;  %v1005_v35 = vsub.f32 1.5, %v1004_v22  ;;  %v726_v60 = vadd.f32 0.00667009, %v710_v42 }
 0x175   : > { %v1000_v34 = vsel %vm998_vm10, %v999_v9, %v997_v45  ;;  %v961_v11 = vsel %vm960_vm13, %v2543_v17, %v959_v49  ;;  %v963_v3 = vand.u32 2147483648, %v2543_v17  ;;  %1884 = vrsqrt.f32 %v2658_v20  ;;  %v2693_v49 = vpop.f32.mrf.mxu0 }
 0x176   : > { %v894_v4 = vmul.f32 %v878_v29, %v2527_v56  ;;  %v837_v61 = vmul.f32 %v821_v15, %v2572_v44  ;;  %v1039_v23 = vmul.f32 %v2627_v41, %v1038_v39  ;;  %v742_v54 = vmul.f32 %v726_v60, %v2641_v57 }
 0x177   : > { %v1137_v50 = vmul.f32 %v1000_v34, %v913_v10  ;;  %v831_v18 = vmul.f32 %v815_v43, %v2576_v62  ;;  %v967_v48 = vmul.f32 %v2635_v21, %v966_v33  ;;  %v713_v7 = vmul.f32 -0.0012624911, %v2662_v32 }
 0x178   : > { %v1165_v9 = vsub.f32 3.1415927, %v1133_v46  ;;  %v866_v5 = vmul.f32 %v850_v51, %v2537_v19  ;;  %v1006_v0 = vmul.f32 %v2582_v13, %v1005_v35  ;;  %v758_v6 = vadd.f32 -0.017088126, %v742_v54 }
 0x179   : > { %v964_v56 = vsel %vm962_vm15, %v963_v3, %v961_v11  ;;  %vm1008_vm14 = vcmp.eq.f32.partialorder %v2560_v47, inf  ;;  %v729_v45 = vadd.f32 0.00667009, %v713_v7  ;;  %v2684_v16 = vsub.f32 1.0, %v2662_v32  ;;  %v2730_v7 = vpop.permute.xlu2 %1219 }
 0x17a   : > { %v910_v52 = vadd.f32 1.5707963, %v894_v4  ;;  %v853_v22 = vadd.f32 0.08897899, %v837_v61  ;;  %v1040_v10 = vmul.f32 0.5, %v1039_v23  ;;  %v774_v13 = vmul.f32 %v758_v6, %v2641_v57 }
 0x17b   : > { %v2695_v17 = vpop.eup %1884  ;;  %v1169_v58 = vsub.f32 3.1415927, %v1137_v50  ;;  %v847_v29 = vadd.f32 0.08897899, %v831_v18  ;;  %v968_v15 = vmul.f32 0.5, %v967_v48  ;;  %v745_v39 = vmul.f32 %v729_v45, %v2662_v32 }
 0x17c   : > { %v2700_v28 = vsel %vm2651_vm0, %v1133_v46, %v1165_v9  ;;  %v882_v1 = vadd.f32 -0.2145988, %v866_v5  ;;  %v1007_v42 = vmul.f32 %v1006_v0, %v2560_v47  ;;  %v790_v43 = vadd.f32 0.03089188, %v774_v13  ;;  %v2733_v0 = vpop.f32.mrf.mxu1 }
 0x17d   : > { %v1050_v51 = vmul.f32 %v2695_v17, %v2658_v20  ;;  %v761_v35 = vadd.f32 -0.017088126, %v745_v39  ;;  %1886 = vrsqrt.f32 %v2684_v16  ;;  %v3597_v36 = vclamps-f32 %v2693_v49, 0.99999 }
 0x17e   : > { %v1134_v46 = vmul.f32 %v964_v56, %v910_v52  ;;  %v869_v60 = vmul.f32 %v853_v22, %v2572_v44  ;;  %v1041_v34 = vsub.f32 1.5, %v1040_v10  ;;  %v806_v11 = vmul.f32 %v790_v43, %v2641_v57 }
 0x17f   : > { %v863_v27 = vmul.f32 %v847_v29, %v2576_v62  ;;  %v969_v40 = vsub.f32 1.5, %v968_v15  ;;  %v777_v3 = vmul.f32 %v761_v35, %v2662_v32  ;;  %v2719_v4 = vand.u32 2147483647, %v3597_v36 }
 0x180   : > { %v2722_v61 = vmul.f32 1.5, %v2700_v28  ;;  %vm1010_vm1 = vcmp.eq.f32.partialorder %v2560_v47, 0.0  ;;  %v1011_v23 = vand.u32 2147483648, %v2560_v47  ;;  %v822_v54 = vadd.f32 -0.050174303, %v806_v11 }
 0x181   : > { %v898_v18 = vmul.f32 %v882_v1, %v2537_v19  ;;  %v1009_v48 = vsel %vm1008_vm14, %v2560_v47, %v1007_v42  ;;  %v1051_v9 = vmul.f32 %v2695_v17, %v1050_v51  ;;  %v793_v5 = vadd.f32 0.03089188, %v777_v3 }
 0x182   : > { %v1166_v6 = vsub.f32 3.1415927, %v1134_v46  ;;  %vm1264_vm2 = vcmp.eq.s32.totalorder %v2622_v12, %v2730_v7  ;;  %v1042_v56 = vmul.f32 %v2627_v41, %v1041_v34  ;;  %v838_v45 = vmul.f32 %v822_v54, %v2641_v57 }
 0x183   : > { %v704_v19 = vmul.f32 -0.0012624911, %v2719_v4  ;;  %v2740_v52 = vpop.eup %1886  ;;  %v2744_v22 = vsel %vm2688_vm11, %v1137_v50, %v1169_v58  ;;  %v885_v10 = vadd.f32 -0.2145988, %v869_v60  ;;  %v879_v13 = vadd.f32 -0.2145988, %v863_v27  ;;  %v2761_v60 = vpop.permute.xlu1 %1216 }
 0x184   : > { %v970_v29 = vmul.f32 %v2635_v21, %v969_v40  ;;  %v1012_v15 = vsel %vm1010_vm1, %v1011_v23, %v1009_v48  ;;  %v809_v39 = vmul.f32 %v793_v5, %v2662_v32  ;;  %v3596_v1 = vclamps-f32 %v2733_v0, 0.99999 }
 0x185   : > { %v720_v41 = vadd.f32 0.00667009, %v704_v19  ;;  %v914_v42 = vadd.f32 1.5707963, %v898_v18  ;;  %vm1044_vm3 = vcmp.eq.f32.partialorder %v2588_v24, inf  ;;  %v1052_v51 = vmul.f32 0.5, %v1051_v9 }
 0x186   : > { %v854_v43 = vadd.f32 0.08897899, %v838_v45  ;;  %v1182_v50 = vsel %vm2705_vm12, %v1134_v46, %v1166_v6  ;;  %v1043_v37 = vmul.f32 %v1042_v56, %v2588_v24  ;;  %vm1046_vm5 = vcmp.eq.f32.partialorder %v2588_v24, 0.0 }
 0x187   : > { %v1086_v47 = vmul.f32 %v2740_v52, %v2684_v16  ;;  %v901_v21 = vmul.f32 %v885_v10, %v2572_v44  ;;  %v895_v58 = vmul.f32 %v879_v13, %v2576_v62  ;;  %v971_v35 = vmul.f32 %v970_v29, %v2599_v38 }
 0x188   : > { %v736_v34 = vmul.f32 %v720_v41, %v2719_v4  ;;  %v1047_v33 = vand.u32 2147483648, %v2588_v24  ;;  %vm1263_vm6 = vcmp.eq.s32.totalorder %v2622_v12, %v2761_v60  ;;  %v825_v46 = vadd.f32 -0.050174303, %v809_v39 }
 0x189   : > { %v2769_v11 = vand.u32 2147483647, %v3596_v1  ;;  %v1280_v27 = vmul.f32 1.5, %v1182_v50  ;;  %v1138_v44 = vmul.f32 %v1012_v15, %v914_v42  ;;  %v870_v62 = vmul.f32 %v854_v43, %v2641_v57 }
 0x18a   : > { %v1053_v40 = vsub.f32 1.5, %v1052_v51  ;;  %v1045_v3 = vsel %vm1044_vm3, %v2588_v24, %v1043_v37  ;;  %vm972_vm7 = vcmp.eq.f32.partialorder %v2599_v38, inf  ;;  %v1087_v23 = vmul.f32 %v2740_v52, %v1086_v47 }
 0x18b   : > { %v2778_v54 = vsub.f32 1.0, %v2719_v4  ;;  %v917_v18 = vadd.f32 1.5707963, %v901_v21  ;;  %v911_v48 = vadd.f32 1.5707963, %v895_v58  ;;  %v973_v9 = vsel %vm972_vm7, %v2599_v38, %v971_v35 }
 0x18c   : > { %v752_v5 = vadd.f32 -0.017088126, %v736_v34  ;;  %vm974_vm4 = vcmp.eq.f32.partialorder %v2599_v38, 0.0  ;;  %v975_v6 = vand.u32 2147483648, %v2599_v38  ;;  %v841_v56 = vmul.f32 %v825_v46, %v2662_v32 }
 0x18d   : > { %v707_v45 = vmul.f32 -0.0012624911, %v2769_v11  ;;  %v1170_v19 = vsub.f32 3.1415927, %v1138_v44  ;;  %v1296_v10 = vsel %vm1264_vm2, %v1280_v27, %v1182_v50  ;;  %v886_v13 = vadd.f32 -0.2145988, %v870_v62 }
 0x18e   : > { %v1054_v29 = vmul.f32 %v2695_v17, %v1053_v40  ;;  %v1048_v15 = vsel %vm1046_vm5, %v1047_v33, %v1045_v3  ;;  %v976_v39 = vsel %vm974_vm4, %v975_v6, %v973_v9  ;;  %v1088_v41 = vmul.f32 0.5, %v1087_v23  ;;  %v2841_v23 = vpop.f32.mrf.mxu2  ;;  %v2852_v6 = vpop.f32.mrf.mxu3 }
 0x18f   : > { %1888 = vrsqrt.f32 %v2778_v54  ;;  %v1141_v38 = vmul.f32 %v1048_v15, %v917_v18  ;;  %v1135_v42 = vmul.f32 %v976_v39, %v911_v48  ;;  %v1295_v43 = vsel %vm1263_vm6, %v2722_v61, %v2700_v28 }
 0x190   : > { %v768_v51 = vmul.f32 %v752_v5, %v2719_v4  ;;  %vm1154_vm8 = vcmp.ge.f32.partialorder %v1789_v55, 0.0  ;;  %v857_v17 = vadd.f32 0.08897899, %v841_v56  ;;  %v723_v24 = vadd.f32 0.00667009, %v707_v45 }
 0x191   : > { %v2800_v50 = vmul.f32 0.63662, %v1296_v10  ;;  %vm2804_vm9 = vcmp.ge.f32.partialorder %v1792_v31, 0.0  ;;  %v902_v47 = vmul.f32 %v886_v13, %v2641_v57  ;;  %v1055_v21 = vmul.f32 %v1054_v29, %v2658_v20  ;;  %v2825_v57 = vpop.permute.xlu0 %1222 }
 0x192   : > { %v2811_v28 = vmul.f32 1.5, %v2744_v22  ;;  %v2813_v61 = vsel %vm1154_vm8, %v1138_v44, %v1170_v19  ;;  %v2815_v26 = vmul.f32 0.63662, %v1295_v43  ;;  %v1089_v55 = vsub.f32 1.5, %v1088_v41  ;;  %v2872_v41 = vpop.permute.xlu2 %1225 }
 0x193   : > { %v1173_v58 = vsub.f32 3.1415927, %v1141_v38  ;;  %v1167_v35 = vsub.f32 3.1415927, %v1135_v42  ;;  %v784_v34 = vadd.f32 0.03089188, %v768_v51  ;;  %v873_v33 = vmul.f32 %v857_v17, %v2662_v32 }
 0x194   : > { %vm2821_vm10 = vcmp.ge.f32.partialorder %v1786_v2, 0.0  ;;  %vm1056_vm13 = vcmp.eq.f32.partialorder %v2658_v20, inf  ;;  %v739_v46 = vmul.f32 %v723_v24, %v2769_v11  ;;  %v2831_v27 = vmul.f32 1.5, %v2813_v61  ;;  %v2882_v24 = vpop.permute.xlu1 %1228 }
 0x195   : > { %v2817_v63 = vpop.eup %1888  ;;  %vm1265_vm15 = vcmp.eq.s32.totalorder %v2622_v12, %v2825_v57  ;;  %v918_v30 = vadd.f32 1.5707963, %v902_v47  ;;  %v1057_v2 = vsel %vm1056_vm13, %v2658_v20, %v1055_v21  ;;  %vm1058_vm0 = vcmp.eq.f32.partialorder %v2658_v20, 0.0 }
 0x196   : > { %v1059_v40 = vand.u32 2147483648, %v2658_v20  ;;  %v1090_v3 = vmul.f32 %v2740_v52, %v1089_v55  ;;  %v2845_v18 = vsel %vm2804_vm9, %v1141_v38, %v1173_v58  ;;  %v1183_v48 = vsel %vm2821_vm10, %v1135_v42, %v1167_v35 }
 0x197   : > { %v800_v9 = vmul.f32 %v784_v34, %v2719_v4  ;;  %v978_v5 = vmul.f32 %v2817_v63, %v2778_v54  ;;  %vm2856_vm14 = vcmp.ge.f32.partialorder %v1793_v8, 0.0  ;;  %v889_v52 = vadd.f32 -0.2145988, %v873_v33 }
 0x198   : > { %v1060_v56 = vsel %vm1058_vm0, %v1059_v40, %v1057_v2  ;;  %v755_v45 = vadd.f32 -0.017088126, %v739_v46  ;;  %v2861_v19 = vsub.f32 1.0, %v2769_v11  ;;  %vm1092_vm11 = vcmp.eq.f32.partialorder %v2684_v16, inf }
 0x199   : > { %v1142_v10 = vmul.f32 %v1060_v56, %v918_v30  ;;  %vm1094_vm12 = vcmp.eq.f32.partialorder %v2684_v16, 0.0  ;;  %v1794_v13 = vclamps-f32 %v2841_v23, 0.99999  ;;  %v1281_v29 = vmul.f32 1.5, %v1183_v48 }
 0x19a   : > { %v1091_v15 = vmul.f32 %v1090_v3, %v2684_v16  ;;  %v1095_v53 = vand.u32 2147483648, %v2684_v16  ;;  %v3600_v8 = vclamps-f32 %v2852_v6, 0.99999  ;;  %v2870_v39 = vmul.f32 1.5, %v2845_v18 }
 0x19b   : > { %v816_v38 = vadd.f32 -0.050174303, %v800_v9  ;;  %v979_v42 = vmul.f32 %v2817_v63, %v978_v5  ;;  %v2877_v43 = vand.u32 2147483647, %v1794_v13  ;;  %v905_v51 = vmul.f32 %v889_v52, %v2662_v32  ;;  %v2894_v32 = vpop.f32.mrf.mxu1 }
 0x19c   : > { %v771_v17 = vmul.f32 %v755_v45, %v2769_v11  ;;  %1890 = vrsqrt.f32 %v2861_v19  ;;  %v2886_v37 = vand.u32 2147483647, %v3600_v8  ;;  %v1174_v47 = vsub.f32 3.1415927, %v1142_v10 }
 0x19d   : > { %vm1267_vm1 = vcmp.eq.s32.totalorder %v2622_v12, %v2882_v24  ;;  %v711_v21 = vmul.f32 -0.0012624911, %v2877_v43  ;;  %v2892_v55 = vsub.f32 1.0, %v2877_v43  ;;  %v1297_v58 = vsel %vm1265_vm15, %v1281_v29, %v1183_v48 }
 0x19e   : > { %v1093_v35 = vsel %vm1092_vm11, %v2684_v16, %v1091_v15  ;;  %v714_v34 = vmul.f32 -0.0012624911, %v2886_v37  ;;  %v2904_v31 = vsub.f32 1.0, %v2886_v37  ;;  %v832_v33 = vmul.f32 %v816_v38, %v2719_v4 }
 0x19f   : > { %v980_v46 = vmul.f32 0.5, %v979_v42  ;;  %v727_v30 = vadd.f32 0.00667009, %v711_v21  ;;  %1892 = vrsqrt.f32 %v2892_v55  ;;  %v921_v2 = vadd.f32 1.5707963, %v905_v51 }
 0x1a0   : > { %v787_v40 = vadd.f32 0.03089188, %v771_v17  ;;  %v1299_v3 = vsel %vm1267_vm1, %v2811_v28, %v2744_v22  ;;  %v3599_v48 = vclamps-f32 %v2894_v32, 0.99999  ;;  %v2916_v9 = vsel %vm2856_vm14, %v1142_v10, %v1174_v47 }
 0x1a1   : > { %v743_v5 = vmul.f32 %v727_v30, %v2877_v43  ;;  %v730_v56 = vadd.f32 0.00667009, %v714_v34  ;;  %1894 = vrsqrt.f32 %v2904_v31  ;;  %v2922_v45 = vmul.f32 0.63662, %v1297_v58 }
 0x1a2   : > { %v2920_v52 = vpop.eup %1890  ;;  %v1096_v29 = vsel %vm1094_vm12, %v1095_v53, %v1093_v35  ;;  %v987_v22 = vand.u32 2147483648, %v2778_v54  ;;  %v848_v15 = vadd.f32 0.08897899, %v832_v33  ;;  %v981_v20 = vsub.f32 1.5, %v980_v46  ;;  %v2939_v53 = vpop.f32.mrf.mxu2 }
 0x1a3   : > { %v759_v10 = vadd.f32 -0.017088126, %v743_v5  ;;  %v746_v38 = vmul.f32 %v730_v56, %v2886_v37  ;;  %v2930_v42 = vmul.f32 1.5, %v2916_v9  ;;  %v803_v51 = vmul.f32 %v787_v40, %v2769_v11  ;;  %v2943_v35 = vpop.permute.xlu2 %1231 }
 0x1a4   : > { %v2933_v17 = vmul.f32 0.63662, %v1299_v3  ;;  %v2937_v16 = vand.u32 2147483647, %v3599_v48  ;;  %v1145_v21 = vmul.f32 %v1096_v29, %v921_v2  ;;  %v1014_v58 = vmul.f32 %v2920_v52, %v2861_v19 }
 0x1a5   : > { %v1893_v47 = vpop.eup %1892  ;;  %v775_v34 = vmul.f32 %v759_v10, %v2877_v43  ;;  %v762_v33 = vadd.f32 -0.017088126, %v746_v38  ;;  %vm1268_vm3 = vcmp.eq.s32.totalorder %v2622_v12, %v2943_v35  ;;  %v864_v2 = vmul.f32 %v848_v15, %v2719_v4 }
 0x1a6   : > { %v1062_v46 = vmul.f32 %v1893_v47, %v2892_v55  ;;  %v708_v30 = vmul.f32 -0.0012624911, %v2937_v16  ;;  %v2951_v40 = vsub.f32 1.0, %v2937_v16  ;;  %v3598_v29 = vclamps-f32 %v2939_v53, 0.99999 }
 0x1a7   : > { %v2953_v3 = vpop.eup %1894  ;;  %v791_v5 = vadd.f32 0.03089188, %v775_v34  ;;  %v778_v56 = vmul.f32 %v762_v33, %v2886_v37  ;;  %v819_v10 = vadd.f32 -0.050174303, %v803_v51  ;;  %vm2962_vm5 = vcmp.ge.f32.partialorder %v1796_v25, 0.0 }
 0x1a8   : > { %v1063_v38 = vmul.f32 %v1893_v47, %v1062_v46  ;;  %v1098_v59 = vmul.f32 %v2953_v3, %v2904_v31  ;;  %v724_v1 = vadd.f32 0.00667009, %v708_v30  ;;  %v982_v36 = vmul.f32 %v2817_v63, %v981_v20 }
 0x1a9   : > { %v807_v15 = vmul.f32 %v791_v5, %v2877_v43  ;;  %v794_v34 = vadd.f32 0.03089188, %v778_v56  ;;  %1896 = vrsqrt.f32 %v2951_v40  ;;  %vm984_vm7 = vcmp.eq.f32.partialorder %v2778_v54, inf }
 0x1aa   : > { %v1015_v51 = vmul.f32 %v2920_v52, %v1014_v58  ;;  %v1064_v33 = vmul.f32 0.5, %v1063_v38  ;;  %v1099_v46 = vmul.f32 %v2953_v3, %v1098_v59  ;;  %v740_v14 = vmul.f32 %v724_v1, %v2937_v16 }
 0x1ab   : > { %v1300_v25 = vsel %vm1268_vm3, %v2831_v27, %v2813_v61  ;;  %v823_v63 = vadd.f32 -0.050174303, %v807_v15  ;;  %v810_v20 = vmul.f32 %v794_v34, %v2886_v37  ;;  %v2981_v30 = vand.u32 2147483647, %v3598_v29 }
 0x1ac   : > { %v880_v5 = vadd.f32 -0.2145988, %v864_v2  ;;  %v835_v58 = vmul.f32 %v819_v10, %v2769_v11  ;;  %v756_v56 = vadd.f32 -0.017088126, %v740_v14  ;;  %v1177_v1 = vsub.f32 3.1415927, %v1145_v21 }
 0x1ad   : > { %vm986_vm4 = vcmp.eq.f32.partialorder %v2778_v54, 0.0  ;;  %v839_v38 = vmul.f32 %v823_v63, %v2877_v43  ;;  %v826_v44 = vadd.f32 -0.050174303, %v810_v20  ;;  %v1100_v61 = vmul.f32 0.5, %v1099_v46  ;;  %v2998_v46 = vpop.permute.xlu0 %1243 }
 0x1ae   : > { %v983_v27 = vmul.f32 %v982_v36, %v2778_v54  ;;  %v2988_v15 = vmul.f32 0.63662, %v1300_v25  ;;  %v1065_v34 = vsub.f32 1.5, %v1064_v33  ;;  %v772_v29 = vmul.f32 %v756_v56, %v2937_v16 }
 0x1af   : > { %v2991_v2 = vpop.eup %1896  ;;  %v1016_v10 = vmul.f32 0.5, %v1015_v51  ;;  %v855_v62 = vadd.f32 0.08897899, %v839_v38  ;;  %v842_v14 = vmul.f32 %v826_v44, %v2886_v37  ;;  %v712_v48 = vmul.f32 -0.0012624911, %v2981_v30 }
 0x1b0   : > { %v896_v59 = vmul.f32 %v880_v5, %v2719_v4  ;;  %v851_v63 = vadd.f32 0.08897899, %v835_v58  ;;  %v788_v20 = vadd.f32 0.03089188, %v772_v29  ;;  %v1026_v36 = vmul.f32 %v2991_v2, %v2951_v40 }
 0x1b1   : > { %v871_v33 = vmul.f32 %v855_v62, %v2877_v43  ;;  %v858_v25 = vadd.f32 0.08897899, %v842_v14  ;;  %v1101_v56 = vsub.f32 1.5, %v1100_v61  ;;  %v728_v8 = vadd.f32 0.00667009, %v712_v48 }
 0x1b2   : > { %v1193_v51 = vsel %vm2962_vm5, %v1145_v21, %v1177_v1  ;;  %vm1272_vm8 = vcmp.eq.s32.totalorder %v2622_v12, %v2998_v46  ;;  %v1066_v44 = vmul.f32 %v1893_v47, %v1065_v34  ;;  %v804_v4 = vmul.f32 %v788_v20, %v2937_v16 }
 0x1b3   : > { %v985_v29 = vsel %vm984_vm7, %v2778_v54, %v983_v27  ;;  %v874_v5 = vmul.f32 %v858_v25, %v2886_v37  ;;  %v1027_v62 = vmul.f32 %v2991_v2, %v1026_v36  ;;  %v744_v58 = vmul.f32 %v728_v8, %v2981_v30 }
 0x1b4   : > { %v867_v48 = vmul.f32 %v851_v63, %v2769_v11  ;;  %v1017_v28 = vsub.f32 1.5, %v1016_v10  ;;  %v887_v21 = vadd.f32 -0.2145988, %v871_v33  ;;  %v820_v1 = vadd.f32 -0.050174303, %v804_v4  ;;  %v3024_v63 = vpop.f32.mrf.mxu3 }
 0x1b5   : > { %v912_v38 = vadd.f32 1.5707963, %v896_v59  ;;  %v1304_v47 = vsel %vm1272_vm8, %v2930_v42, %v2916_v9  ;;  %v890_v61 = vadd.f32 -0.2145988, %v874_v5  ;;  %v1102_v27 = vmul.f32 %v2953_v3, %v1101_v56  ;;  %v3037_v56 = vpop.permute.xlu1 %1234 }
 0x1b6   : > { %v1291_v34 = vmul.f32 1.5, %v1193_v51  ;;  %v988_v8 = vsel %vm986_vm4, %v987_v22, %v985_v29  ;;  %v1067_v10 = vmul.f32 %v1066_v44, %v2892_v55  ;;  %v760_v14 = vadd.f32 -0.017088126, %v744_v58  ;;  %v3039_v44 = vpop.permute.xlu2 %1237 }
 0x1b7   : > { %vm1068_vm9 = vcmp.eq.f32.partialorder %v2892_v55, inf  ;;  %v836_v9 = vmul.f32 %v820_v1, %v2937_v16  ;;  %v1028_v42 = vmul.f32 0.5, %v1027_v62  ;;  %v883_v20 = vadd.f32 -0.2145988, %v867_v48 }
 0x1b8   : > { %v1018_v3 = vmul.f32 %v2920_v52, %v1017_v28  ;;  %v3030_v36 = vmul.f32 0.63662, %v1304_v47  ;;  %v903_v54 = vmul.f32 %v887_v21, %v2877_v43  ;;  %v3033_v22 = vmul.f32 %v988_v8, %v912_v38  ;;  %v3057_v21 = vpop.permute.xlu0 %1252 }
 0x1b9   : > { %v906_v33 = vmul.f32 %v890_v61, %v2886_v37  ;;  %v1103_v25 = vmul.f32 %v1102_v27, %v2904_v31  ;;  %v3602_v4 = vclamps-f32 %v3024_v63, 0.99999  ;;  %v1069_v29 = vsel %vm1068_vm9, %v2892_v55, %v1067_v10 }
 0x1ba   : > { %vm1070_vm10 = vcmp.eq.f32.partialorder %v2892_v55, 0.0  ;;  %v1071_v52 = vand.u32 2147483648, %v2892_v55  ;;  %v776_v43 = vmul.f32 %v760_v14, %v2981_v30  ;;  %v852_v5 = vadd.f32 0.08897899, %v836_v9 }
 0x1bb   : > { %v1029_v62 = vsub.f32 1.5, %v1028_v42  ;;  %v3047_v37 = vsub.f32 1.0, %v2981_v30  ;;  %v3051_v58 = vand.u32 2147483647, %v3602_v4  ;;  %v899_v48 = vmul.f32 %v883_v20, %v2769_v11 }
 0x1bc   : > { %vm1020_vm13 = vcmp.eq.f32.partialorder %v2861_v19, inf  ;;  %v919_v28 = vadd.f32 1.5707963, %v903_v54  ;;  %vm1104_vm0 = vcmp.eq.f32.partialorder %v2904_v31, inf  ;;  %vm1106_vm14 = vcmp.eq.f32.partialorder %v2904_v31, 0.0  ;;  %v3096_v23 = vpop.f32.mrf.mxu3 }
 0x1bd   : > { %v922_v1 = vadd.f32 1.5707963, %v906_v33  ;;  %v1105_v38 = vsel %vm1104_vm0, %v2904_v31, %v1103_v25  ;;  %v1107_v47 = vand.u32 2147483648, %v2904_v31  ;;  %vm1275_vm11 = vcmp.eq.s32.totalorder %v2622_v12, %v3057_v21 }
 0x1be   : > { %v1072_v11 = vsel %vm1070_vm10, %v1071_v52, %v1069_v29  ;;  %v1307_v61 = vsel %vm1275_vm11, %v1291_v34, %v1193_v51  ;;  %v792_v27 = vadd.f32 0.03089188, %v776_v43  ;;  %v715_v8 = vmul.f32 -0.0012624911, %v3051_v58 }
 0x1bf   : > { %v868_v10 = vmul.f32 %v852_v5, %v2937_v16  ;;  %v1030_v14 = vmul.f32 %v2991_v2, %v1029_v62  ;;  %1898 = vrsqrt.f32 %v3047_v37  ;;  %v3073_v9 = vsub.f32 1.0, %v3051_v58  ;;  %v3104_v62 = vpop.permute.xlu2 %1246 }
 0x1c0   : > { %v1143_v55 = vmul.f32 %v1072_v11, %v919_v28  ;;  %v1108_v20 = vsel %vm1106_vm14, %v1107_v47, %v1105_v38  ;;  %v731_v54 = vadd.f32 0.00667009, %v715_v8  ;;  %v1019_v51 = vmul.f32 %v1018_v3, %v2861_v19 }
 0x1c1   : > { %vm3081_vm12 = vcmp.ge.f32.partialorder %v1794_v13, 0.0  ;;  %v1146_v2 = vmul.f32 %v1108_v20, %v922_v1  ;;  %1900 = vrsqrt.f32 %v3073_v9  ;;  %v3645_v33 = vclamps-f32 %v2852_v6, 0.99999  ;;  %v3102_v6 = vpop.permute.xlu1 %1240 }
 0x1c2   : > { %v3092_v31 = vmul.f32 0.63662, %v1307_v61  ;;  %v808_v29 = vmul.f32 %v792_v27, %v2981_v30  ;;  %v747_v3 = vmul.f32 %v731_v54, %v3051_v58  ;;  %v1168_v13 = vsub.f32 3.1415927, %v3033_v22 }
 0x1c3   : > { %vm3088_vm5 = vcmp.ge.f32.partialorder %v3645_v33, 0.0  ;;  %v3099_v52 = vadd.f32 1.5707963, %v899_v48  ;;  %v884_v43 = vadd.f32 -0.2145988, %v868_v10  ;;  %v1031_v5 = vmul.f32 %v1030_v14, %v2951_v40 }
 0x1c4   : > { %v1175_v28 = vsub.f32 3.1415927, %v1143_v55  ;;  %vm1032_vm7 = vcmp.eq.f32.partialorder %v2951_v40, inf  ;;  %v763_v1 = vadd.f32 -0.017088126, %v747_v3  ;;  %vm1271_vm4 = vcmp.eq.s32.totalorder %v2622_v12, %v3102_v6 }
 0x1c5   : > { %v3109_v38 = vpop.eup %1898  ;;  %v3114_v48 = vsel %vm1020_vm13, %v2861_v19, %v1019_v51  ;;  %v1178_v47 = vsub.f32 3.1415927, %v1146_v2  ;;  %vm1034_vm9 = vcmp.eq.f32.partialorder %v2951_v40, 0.0  ;;  %v3601_v11 = vclamps-f32 %v3096_v23, 0.99999 }
 0x1c6   : > { %v1035_v61 = vand.u32 2147483648, %v2951_v40  ;;  %v1339_v27 = vsub.f32 1.0, %v3092_v31  ;;  %v824_v8 = vadd.f32 -0.050174303, %v808_v29  ;;  %v779_v10 = vmul.f32 %v763_v1, %v3051_v58 }
 0x1c7   : > { %v1901_v14 = vpop.eup %1900  ;;  %v900_v20 = vmul.f32 %v884_v43, %v2937_v16  ;;  %v1033_v54 = vsel %vm1032_vm7, %v2951_v40, %v1031_v5  ;;  %v1303_v51 = vsel %vm1271_vm4, %v2870_v39, %v2845_v18  ;;  %v3130_v33 = vand.u32 2147483647, %v3601_v11 }
 0x1c8   : > { %v1191_v29 = vsel %vm3081_vm12, %v1143_v55, %v1175_v28  ;;  %v1074_v3 = vmul.f32 %v3109_v38, %v3047_v37  ;;  %v795_v1 = vadd.f32 0.03089188, %v779_v10  ;;  %v1110_v16 = vmul.f32 %v1901_v14, %v3073_v9 }
 0x1c9   : > { %v1194_v43 = vsel %vm3088_vm5, %v1146_v2, %v1178_v47  ;;  %v716_v5 = vmul.f32 -0.0012624911, %v3130_v33  ;;  %v3141_v18 = vsub.f32 1.0, %v3130_v33  ;;  %v3648_v39 = vsub.f32 1.0, %v2933_v17 }
 0x1ca   : > { %v840_v34 = vmul.f32 %v824_v8, %v2981_v30  ;;  %v811_v55 = vmul.f32 %v795_v1, %v3051_v58  ;;  %v1111_v28 = vmul.f32 %v1901_v14, %v1110_v16  ;;  %vm1359_vm10 = vcmp.lt.s32.totalorder %v2622_v12, 16 }
 0x1cb   : > { %v1347_v11 = vmul.f32 30.0, %v3648_v39  ;;  %v916_v10 = vadd.f32 1.5707963, %v900_v20  ;;  %v1036_v25 = vsel %vm1034_vm9, %v1035_v61, %v1033_v54  ;;  %v732_v2 = vadd.f32 0.00667009, %v716_v5  ;;  %v3159_v20 = vpop.permute.xlu2 %1255 }
 0x1cc   : > { %1902 = vrsqrt.f32 %v3141_v18  ;;  %v1289_v47 = vmul.f32 1.5, %v1191_v29  ;;  %v827_v42 = vadd.f32 -0.050174303, %v811_v55  ;;  %v1112_v59 = vmul.f32 0.5, %v1111_v28 }
 0x1cd   : > { %v3151_v4 = vmul.f32 0.63662, %v1303_v51  ;;  %v1292_v17 = vmul.f32 1.5, %v1194_v43  ;;  %v1075_v8 = vmul.f32 %v3109_v38, %v1074_v3  ;;  %v748_v1 = vmul.f32 %v732_v2, %v3130_v33 }
 0x1ce   : > { %v3157_v16 = vsel %vm1359_vm10, %v1347_v11, -1e+30  ;;  %v3649_v40 = vclamps-f32 %v2894_v32, 0.99999  ;;  %v856_v54 = vadd.f32 0.08897899, %v840_v34  ;;  %v843_v51 = vmul.f32 %v827_v42, %v3051_v58 }
 0x1cf   : > { %v1113_v5 = vsub.f32 1.5, %v1112_v59  ;;  %1384 = vmax.xlane.f32.xlu1 %v3157_v16  ;;  %v3652_v3 = vsub.f32 1.0, %v2815_v26  ;;  %v1140_v55 = vmul.f32 %v1036_v25, %v916_v10  ;;  %vm1116_vm0 = vcmp.eq.f32.partialorder %v3073_v9, inf }
 0x1d0   : > { %vm3163_vm13 = vcmp.ge.f32.partialorder %v3649_v40, 0.0  ;;  %v764_v11 = vadd.f32 -0.017088126, %v748_v1  ;;  %v3653_v28 = vsub.f32 1.0, %v2800_v50  ;;  %vm1022_vm14 = vcmp.eq.f32.partialorder %v2861_v19, 0.0 }
 0x1d1   : > { %v1343_v39 = vmul.f32 30.0, %v3652_v3  ;;  %v859_v2 = vadd.f32 0.08897899, %v843_v51  ;;  %v1114_v40 = vmul.f32 %v1901_v14, %v1113_v5  ;;  %vm1276_vm12 = vcmp.eq.s32.totalorder %v2622_v12, %v3159_v20  ;;  %v3198_v3 = vpop.permute.xlu1 %1249 }
 0x1d2   : > { %v1344_v32 = vmul.f32 30.0, %v3653_v28  ;;  %v1903_v26 = vpop.eup %1902  ;;  %v3654_v59 = vclamps-f32 %v2693_v49, 0.99999  ;;  %v1076_v50 = vmul.f32 0.5, %v1075_v8  ;;  %vm1118_vm7 = vcmp.eq.f32.partialorder %v3073_v9, 0.0 }
 0x1d3   : > { %v3177_v42 = vsel %vm1359_vm10, %v1343_v39, -1e+30  ;;  %v780_v10 = vmul.f32 %v764_v11, %v3130_v33  ;;  %v1308_v14 = vsel %vm1276_vm12, %v1292_v17, %v1194_v43  ;;  %v875_v25 = vmul.f32 %v859_v2, %v3051_v58 }
 0x1d4   : > { %vm3183_vm5 = vcmp.ge.f32.partialorder %v3654_v59, 0.0  ;;  %1376 = vmax.xlane.f32.xlu2 %v3177_v42  ;;  %v1115_v1 = vmul.f32 %v1114_v40, %v3073_v9  ;;  %v1122_v49 = vmul.f32 %v1903_v26, %v3141_v18  ;;  %v1324_v51 = vmul.f32 0.63662, %v1308_v14 }
 0x1d5   : > { %v1172_v5 = vsub.f32 3.1415927, %v1140_v55  ;;  %vm1273_vm9 = vcmp.eq.s32.totalorder %v2622_v12, %v3104_v62  ;;  %v796_v8 = vadd.f32 0.03089188, %v780_v10  ;;  %v3202_v39 = vsel %vm1359_vm10, %v1344_v32, -1e+30 }
 0x1d6   : > { %v872_v43 = vmul.f32 %v856_v54, %v2981_v30  ;;  %v891_v17 = vadd.f32 -0.2145988, %v875_v25  ;;  %v1119_v11 = vand.u32 2147483648, %v3073_v9  ;;  %v1123_v28 = vmul.f32 %v1903_v26, %v1122_v49 }
 0x1d7   : > { %v1335_v2 = vsub.f32 1.0, %v3151_v4  ;;  %v1305_v40 = vsel %vm1273_vm9, %v1289_v47, %v1191_v29  ;;  %v812_v59 = vmul.f32 %v796_v8, %v3130_v33  ;;  %v1340_v10 = vsub.f32 1.0, %v1324_v51  ;;  %1378 = vmax.xlane.f32.xlu1 %v3202_v39 }
 0x1d8   : > { %v907_v14 = vmul.f32 %v891_v17, %v3051_v58  ;;  %v1117_v32 = vsel %vm1116_vm0, %v3073_v9, %v1115_v1  ;;  %v1124_v54 = vmul.f32 0.5, %v1123_v28  ;;  %v1355_v25 = vmul.f32 30.0, %v1339_v27 }
 0x1d9   : > { %v1188_v4 = vsel %vm3163_vm13, %v1140_v55, %v1172_v5  ;;  %v1077_v49 = vsub.f32 1.5, %v1076_v50  ;;  %v828_v29 = vadd.f32 -0.050174303, %v812_v59  ;;  %v1356_v47 = vmul.f32 30.0, %v1340_v10 }
 0x1da   : > { %v923_v8 = vadd.f32 1.5707963, %v907_v14  ;;  %v1125_v51 = vsub.f32 1.5, %v1124_v54  ;;  %v1536_v58 = vsel %vm1263_vm6, %v3177_v42, 0.0  ;;  %v3226_v1 = vsel %vm1359_vm10, %v1355_v25, -1e+30 }
 0x1db   : > { %v3657_v31 = vand.u32 2147483648, %v2861_v19  ;;  %v3658_v61 = vclamps-f32 %v2733_v0, 0.99999  ;;  %v1120_v60 = vsel %vm1118_vm7, %v1119_v11, %v1117_v32  ;;  %v1321_v50 = vmul.f32 0.63662, %v1305_v40  ;;  %1400 = vmax.xlane.f32.xlu0 %v3226_v1 }
 0x1dc   : > { %v844_v5 = vmul.f32 %v828_v29, %v3130_v33  ;;  %1552 = vadd.xlane.f32.xlu2 %v1536_v58  ;;  %vm1266_vm6 = vcmp.eq.s32.totalorder %v2622_v12, %v2872_v41  ;;  %v1184_v0 = vsel %vm3183_vm5, %v3033_v22, %v1168_v13  ;;  %v1147_v9 = vmul.f32 %v1120_v60, %v923_v8 }
 0x1dd   : > { %v1024_v27 = vsel %vm1022_vm14, %v3657_v31, %v3114_v48  ;;  %vm3235_vm13 = vcmp.ge.f32.partialorder %v3658_v61, 0.0  ;;  %v1286_v48 = vmul.f32 1.5, %v1188_v4  ;;  %v888_v17 = vadd.f32 -0.2145988, %v872_v43  ;;  %v3261_v43 = vpop.permute.xlu1 %1258 }
 0x1de   : > { %v1139_v19 = vmul.f32 %v1024_v27, %v3099_v52  ;;  %v1078_v11 = vmul.f32 %v3109_v38, %v1077_v49  ;;  %v860_v28 = vadd.f32 0.08897899, %v844_v5  ;;  %v3254_v40 = vsel %vm1359_vm10, %v1356_v47, -1e+30 }
 0x1df   : > { %vm1270_vm0 = vcmp.eq.s32.totalorder %v2622_v12, %v3039_v44  ;;  %v1179_v59 = vsub.f32 3.1415927, %v1147_v9  ;;  %v1126_v10 = vmul.f32 %v1903_v26, %v1125_v51  ;;  %v1351_v14 = vmul.f32 30.0, %v1335_v2  ;;  %1402 = vmax.xlane.f32.xlu1 %v3254_v40 }
 0x1e0   : > { %v1282_v34 = vmul.f32 1.5, %v1184_v0  ;;  %v3661_v22 = vclamps-f32 %v3024_v63, 0.99999  ;;  %v1337_v13 = vsub.f32 1.0, %v1321_v50  ;;  %v876_v52 = vmul.f32 %v860_v28, %v3130_v33 }
 0x1e1   : > { %v1171_v38 = vsub.f32 3.1415927, %v1139_v19  ;;  %v1302_v32 = vsel %vm1270_vm0, %v1286_v48, %v1188_v4  ;;  %vm1080_vm5 = vcmp.eq.f32.partialorder %v3047_v37, inf  ;;  %v904_v26 = vmul.f32 %v888_v17, %v2981_v30 }
 0x1e2   : > { %vm1163_vm14 = vcmp.ge.f32.partialorder %v3661_v22, 0.0  ;;  %v1079_v63 = vmul.f32 %v1078_v11, %v3047_v37  ;;  %v892_v25 = vadd.f32 -0.2145988, %v876_v52  ;;  %v1127_v49 = vmul.f32 %v1126_v10, %v3141_v18 }
 0x1e3   : > { %v1195_v54 = vsel %vm1163_vm14, %v1147_v9, %v1179_v59  ;;  %vm1277_vm7 = vcmp.eq.s32.totalorder %v2622_v12, %v3261_v43  ;;  %v3275_v29 = vsel %vm1359_vm10, %v1351_v14, -1e+30  ;;  %v1537_v4 = vsel %vm1264_vm2, %v3202_v39, 0.0 }
 0x1e4   : > { %v1293_v2 = vmul.f32 1.5, %v1195_v54  ;;  %v1318_v47 = vmul.f32 0.63662, %v1302_v32  ;;  %vm1128_vm14 = vcmp.eq.f32.partialorder %v3141_v18, inf  ;;  %1392 = vmax.xlane.f32.xlu2 %v3275_v29  ;;  %1554 = vadd.xlane.f32.xlu0 %v1537_v4  ;;  %v1353_v8 = vmul.f32 30.0, %v1337_v13 }
 0x1e5   : > { %v1187_v51 = vsel %vm3235_vm13, %v1139_v19, %v1171_v38  ;;  %v1083_v58 = vand.u32 2147483648, %v3047_v37  ;;  %v908_v31 = vmul.f32 %v892_v25, %v3130_v33  ;;  %v1081_v27 = vsel %vm1080_vm5, %v3047_v37, %v1079_v63 }
 0x1e6   : > { %v1309_v30 = vsel %vm1277_vm7, %v1293_v2, %v1195_v54  ;;  %vm1082_vm2 = vcmp.eq.f32.partialorder %v3047_v37, 0.0  ;;  %v1131_v61 = vand.u32 2147483648, %v3141_v18  ;;  %v1298_v60 = vsel %vm1266_vm6, %v1282_v34, %v1184_v0 }
 0x1e7   : > { %v1325_v7 = vmul.f32 0.63662, %v1309_v30  ;;  %v1129_v55 = vsel %vm1128_vm14, %v3141_v18, %v1127_v49  ;;  %vm1130_vm13 = vcmp.eq.f32.partialorder %v3141_v18, 0.0  ;;  %v3662_v50 = vsub.f32 1.0, %v2988_v15 }
 0x1e8   : > { %v3663_v5 = vsub.f32 1.0, %v3030_v36  ;;  %v1285_v48 = vmul.f32 1.5, %v1187_v51  ;;  %v1334_v9 = vsub.f32 1.0, %v1318_v47  ;;  %v920_v17 = vadd.f32 1.5707963, %v904_v26 }
 0x1e9   : > { %v1348_v33 = vmul.f32 30.0, %v3662_v50  ;;  %v3306_v37 = vsel %vm1359_vm10, %v1353_v8, -1e+30  ;;  %v1084_v11 = vsel %vm1082_vm2, %v1083_v58, %v1081_v27  ;;  %v924_v28 = vadd.f32 1.5707963, %v908_v31 }
 0x1ea   : > { %v1352_v19 = vmul.f32 30.0, %v3663_v5  ;;  %v1341_v0 = vsub.f32 1.0, %v1325_v7  ;;  %1396 = vmax.xlane.f32.xlu1 %v3306_v37  ;;  %v1314_v59 = vmul.f32 0.63662, %v1298_v60  ;;  %v1132_v18 = vsel %vm1130_vm13, %v1131_v61, %v1129_v55  ;;  %v3348_v7 = vpop.permute.xlu0 %1261 }
 0x1eb   : > { %v1329_v15 = vsub.f32 1.0, %v2922_v45  ;;  %vm1269_vm5 = vcmp.eq.s32.totalorder %v2622_v12, %v3037_v56  ;;  %v3314_v36 = vsel %vm1359_vm10, %v1348_v33, -1e+30  ;;  %v1144_v34 = vmul.f32 %v1084_v11, %v920_v17 }
 0x1ec   : > { %v3318_v10 = vsel %vm1359_vm10, %v1352_v19, -1e+30  ;;  %v1301_v14 = vsel %vm1269_vm5, %v1285_v48, %v1187_v51  ;;  %1386 = vmax.xlane.f32.xlu2 %v3314_v36  ;;  %v1350_v45 = vmul.f32 30.0, %v1334_v9  ;;  %v1148_v22 = vmul.f32 %v1132_v18, %v924_v28 }
 0x1ed   : > { %1394 = vmax.xlane.f32.xlu0 %v3318_v10  ;;  %v1357_v13 = vmul.f32 30.0, %v1341_v0  ;;  %v1330_v52 = vsub.f32 1.0, %v1314_v59  ;;  %v1317_v38 = vmul.f32 0.63662, %v1301_v14  ;;  %v1345_v32 = vmul.f32 30.0, %v1329_v15 }
 0x1ee   : > { %v1176_v54 = vsub.f32 3.1415927, %v1144_v34  ;;  %v3327_v26 = vsel %vm1359_vm10, %v1350_v45, -1e+30  ;;  %v1180_v63 = vsub.f32 3.1415927, %v1148_v22  ;;  %vm1278_vm13 = vcmp.eq.s32.totalorder %v2622_v12, %v3348_v7 }
 0x1ef   : > { %v3331_v2 = vsel %vm1359_vm10, %v1357_v13, -1e+30  ;;  %v1346_v25 = vmul.f32 30.0, %v1330_v52  ;;  %v3664_v49 = vclamps-f32 %v2939_v53, 0.99999  ;;  %v1333_v47 = vsub.f32 1.0, %v1317_v38 }
 0x1f0   : > { %v3665_v4 = vclamps-f32 %v3096_v23, 0.99999  ;;  %v3340_v30 = vsel %vm1359_vm10, %v1345_v32, -1e+30  ;;  %v1540_v48 = vsel %vm1267_vm1, %v3157_v16, 0.0  ;;  %v1541_v57 = vsel %vm1268_vm3, %v3314_v36, 0.0 }
 0x1f1   : > { %vm1160_vm14 = vcmp.ge.f32.partialorder %v3664_v49, 0.0  ;;  %v3346_v58 = vsel %vm1359_vm10, %v1346_v25, -1e+30  ;;  %v1349_v53 = vmul.f32 30.0, %v1333_v47  ;;  %v1538_v19 = vsel %vm1265_vm15, %v3340_v30, 0.0 }
 0x1f2   : > { %1390 = vmax.xlane.f32.xlu1 %v3327_v26  ;;  %vm1164_vm2 = vcmp.ge.f32.partialorder %v3665_v4, 0.0  ;;  %v1192_v8 = vsel %vm1160_vm14, %v1144_v34, %v1176_v54  ;;  %v1539_v27 = vsel %vm1266_vm6, %v3346_v58, 0.0  ;;  %vm1274_vm14 = vcmp.eq.s32.totalorder %v2622_v12, %v3198_v3 }
 0x1f3   : > { %v1196_v51 = vsel %vm1164_vm2, %v1148_v22, %v1180_v63  ;;  %v1290_v31 = vmul.f32 1.5, %v1192_v8  ;;  %v3360_v61 = vsel %vm1359_vm10, %v1349_v53, -1e+30  ;;  %v1545_v21 = vsel %vm1272_vm8, %v3318_v10, 0.0 }
 0x1f4   : > { %1404 = vmax.xlane.f32.xlu2 %v3331_v2  ;;  %v1294_v23 = vmul.f32 1.5, %v1196_v51  ;;  %v1542_v33 = vsel %vm1269_vm5, %v3360_v61, 0.0 }
 0x1f5   : > { %1380 = vmax.xlane.f32.xlu0 %v3340_v30  ;;  %v1306_v60 = vsel %vm1274_vm14, %v1290_v31, %v1192_v8 }
 0x1f6   : > { %v1310_v41 = vsel %vm1278_vm13, %v1294_v23, %v1196_v51  ;;  %v1322_v55 = vmul.f32 0.63662, %v1306_v60 }
 0x1f7   : > { %v1326_v50 = vmul.f32 0.63662, %v1310_v41 }
 0x1f8   : > { %v1338_v5 = vsub.f32 1.0, %v1322_v55 }
 0x1f9   : > { %v1342_v9 = vsub.f32 1.0, %v1326_v50 }
 0x1fa   : > { %1558 = vadd.xlane.f32.xlu1 %v1539_v27  ;;  %v1354_v17 = vmul.f32 30.0, %v1338_v5 }
 0x1fb   : > { %v1358_v11 = vmul.f32 30.0, %v1342_v9 }
 0x1fc   : > { %1382 = vmax.xlane.f32.xlu2 %v3346_v58  ;;  %v3384_v56 = vsel %vm1359_vm10, %v1354_v17, -1e+30 }
 0x1fd   : > { %1388 = vmax.xlane.f32.xlu0 %v3360_v61  ;;  %v3388_v28 = vsel %vm1359_vm10, %v1358_v11, -1e+30  ;;  %v1547_v20 = vsel %vm1274_vm14, %v3384_v56, 0.0 }
 0x1fe   : > { %v1551_v62 = vsel %vm1278_vm13, %v3388_v28, 0.0 }
 0x202   : > { %1564 = vadd.xlane.f32.xlu1 %v1542_v33 }
 0x204   : > { %1556 = vadd.xlane.f32.xlu2 %v1538_v19 }
 0x205   : > { %1560 = vadd.xlane.f32.xlu0 %v1540_v48 }
 0x20c   : > { %1398 = vmax.xlane.f32.xlu2 %v3384_v56 }
 0x20d   : > { %1406 = vmax.xlane.f32.xlu0 %v3388_v28 }
 0x214   : > { %1562 = vadd.xlane.f32.xlu2 %v1541_v57 }
 0x242   : > { %v3396_v24 = vpop.xlane.xlu1 %1384 }
 0x243   : > { %v1412_v0 = vsub.f32 %v3157_v16, %v3396_v24 }
 0x245   : > { %v1432_v59 = vmul.f32 1.442695, %v1412_v0 }
 0x247   : > { %v3400_v18 = vpop.xlane.xlu2 %1376  ;;  %1904 = vpow2.f32 %v1432_v59 }
 0x248   : > { %v1408_v15 = vsub.f32 %v3177_v42, %v3400_v18 }
 0x24a   : > { %v1424_v14 = vmul.f32 1.442695, %v1408_v15  ;;  %v3408_v22 = vpop.xlane.xlu1 %1378 }
 0x24b   : > { %v1409_v38 = vsub.f32 %v3202_v39, %v3408_v22 }
 0x24c   : > { %1906 = vpow2.f32 %v1424_v14 }
 0x24d   : > { %v1905_v34 = vpop.eup %1904  ;;  %v1426_v42 = vmul.f32 1.442695, %v1409_v38 }
 0x24e   : > { %v3406_v35 = vpop.xlane.xlu0 %1400  ;;  %1464 = vadd.xlane.f32.xlu2 %v1905_v34 }
 0x24f   : > { %v3404_v45 = vpop.xlane.xlu2 %1552  ;;  %v1420_v16 = vsub.f32 %v3226_v1, %v3406_v35 }
 0x251   : > { %v1448_v52 = vmul.f32 1.442695, %v1420_v16 }
 0x252   : > { %v1907_v13 = vpop.eup %1906  ;;  %v3428_v27 = vpop.xlane.xlu1 %1402 }
 0x253   : > { %1456 = vadd.xlane.f32.xlu1 %v1907_v13  ;;  %1908 = vpow2.f32 %v1448_v52 }
 0x254   : > { %1910 = vpow2.f32 %v1426_v42 }
 0x257   : > { %v3414_v32 = vpop.xlane.xlu2 %1392  ;;  %v3416_v54 = vpop.xlane.xlu0 %1554 }
 0x258   : > { %v1416_v63 = vsub.f32 %v3275_v29, %v3414_v32 }
 0x259   : > { %v1909_v25 = vpop.eup %1908 }
 0x25a   : > { %v1440_v49 = vmul.f32 1.442695, %v1416_v63  ;;  %1480 = vadd.xlane.f32.xlu2 %v1909_v25  ;;  %v1911_v51 = vpop.eup %1910 }
 0x25c   : > { %1912 = vpow2.f32 %v1440_v49 }
 0x25d   : > { %v3442_v9 = vpop.xlane.xlu1 %1396 }
 0x25e   : > { %v1418_v57 = vsub.f32 %v3306_v37, %v3442_v9 }
 0x25f   : > { %v3420_v4 = vpop.xlane.xlu2 %1386 }
 0x260   : > { %v3422_v47 = vpop.xlane.xlu0 %1394  ;;  %v1413_v39 = vsub.f32 %v3314_v36, %v3420_v4  ;;  %v1444_v15 = vmul.f32 1.442695, %v1418_v57 }
 0x261   : > { %v1417_v8 = vsub.f32 %v3318_v10, %v3422_v47 }
 0x262   : > { %v1913_v53 = vpop.eup %1912  ;;  %v1434_v31 = vmul.f32 1.442695, %v1413_v39  ;;  %1458 = vadd.xlane.f32.xlu2 %v1911_v51 }
 0x263   : > { %v1442_v23 = vmul.f32 1.442695, %v1417_v8  ;;  %1472 = vadd.xlane.f32.xlu0 %v1913_v53 }
 0x264   : > { %1914 = vpow2.f32 %v1434_v31 }
 0x265   : > { %1916 = vpow2.f32 %v1442_v23  ;;  %v3470_v63 = vpop.xlane.xlu1 %1390  ;;  %v1421_v23 = vsub.f32 %v3254_v40, %v3428_v27 }
 0x266   : > { %v1415_v39 = vsub.f32 %v3327_v26, %v3470_v63 }
 0x267   : > { %v3430_v60 = vpop.xlane.xlu2 %1404 }
 0x268   : > { %v3432_v41 = vpop.xlane.xlu0 %1380  ;;  %v1422_v0 = vsub.f32 %v3331_v2, %v3430_v60  ;;  %v1438_v51 = vmul.f32 1.442695, %v1415_v39 }
 0x269   : > { %v1410_v36 = vsub.f32 %v3340_v30, %v3432_v41  ;;  %v1544_v30 = vsel %vm1271_vm4, %v3275_v29, 0.0  ;;  %v1543_v29 = vsel %vm1270_vm0, %v3327_v26, 0.0  ;;  %v1548_v26 = vsel %vm1275_vm11, %v3226_v1, 0.0 }
 0x26a   : > { %v1915_v55 = vpop.eup %1914  ;;  %v1452_v14 = vmul.f32 1.442695, %v1422_v0  ;;  %v1550_v1 = vsel %vm1277_vm7, %v3331_v2, 0.0  ;;  %v3666_v0 = vlaneseq }
 0x26b   : > { %v1428_v50 = vmul.f32 1.442695, %v1410_v36  ;;  %v1917_v33 = vpop.eup %1916  ;;  %1466 = vadd.xlane.f32.xlu0 %v1915_v55  ;;  %v1450_v36 = vmul.f32 1.442695, %v1421_v23 }
 0x26c   : > { %1474 = vadd.xlane.f32.xlu2 %v1917_v33 }
 0x26d   : > { %1918 = vpow2.f32 %v1428_v50  ;;  %v1546_v50 = vsel %vm1273_vm9, %v3306_v37, 0.0 }
 0x26f   : > { %v3436_v5 = vpop.xlane.xlu2 %1382 }
 0x270   : > { %v3438_v19 = vpop.xlane.xlu0 %1388  ;;  %v1411_v6 = vsub.f32 %v3346_v58, %v3436_v5 }
 0x271   : > { %v1414_v48 = vsub.f32 %v3360_v61, %v3438_v19 }
 0x272   : > { %v1430_v16 = vmul.f32 1.442695, %v1411_v6 }
 0x273   : > { %v1436_v17 = vmul.f32 1.442695, %v1414_v48  ;;  %v1919_v11 = vpop.eup %1918  ;;  %v1549_v48 = vsel %vm1276_vm12, %v3254_v40, 0.0  ;;  %v3504_v40 = vpop.xlane.xlu1 %1558 }
 0x274   : > { %1568 = vadd.xlane.f32.xlu2 %v1544_v30  ;;  %1460 = vadd.xlane.f32.xlu0 %v1919_v11 }
 0x275   : > { %1920 = vpow2.f32 %v1436_v17 }
 0x276   : > { %1922 = vpow2.f32 %v1444_v15  ;;  %v3515_v15 = vshrl.u32 %v3666_v0, 7 }
 0x277   : > { %v3452_v59 = vpop.xlane.xlu2 %1556  ;;  %1924 = vpow2.f32 %v1452_v14 }
 0x278   : > { %v3454_v61 = vpop.xlane.xlu0 %1560  ;;  %1926 = vpow2.f32 %v1430_v16 }
 0x27b   : > { %v1921_v34 = vpop.eup %1920  ;;  %v3508_v10 = vpop.xlane.xlu1 %1564 }
 0x27c   : > { %1566 = vadd.xlane.f32.xlu0 %v1543_v29  ;;  %1468 = vadd.xlane.f32.xlu1 %v1921_v34  ;;  %v1923_v42 = vpop.eup %1922  ;;  %v1603_v29 = vadd.s32 8, %v3515_v15 }
 0x27d   : > { %v1925_v49 = vpop.eup %1924 }
 0x27e   : > { %v1927_v8 = vpop.eup %1926 }
 0x27f   : > { %v3462_v13 = vpop.xlane.xlu2 %1398 }
 0x280   : > { %v3464_v52 = vpop.xlane.xlu0 %1406  ;;  %v1419_v38 = vsub.f32 %v3384_v56, %v3462_v13 }
 0x281   : > { %v1423_v58 = vsub.f32 %v3388_v28, %v3464_v52 }
 0x282   : > { %v1446_v44 = vmul.f32 1.442695, %v1419_v38  ;;  %v3521_v38 = vstv %s1800_s30 }
 0x283   : > { %v1454_v25 = vmul.f32 1.442695, %v1423_v58  ;;  %v1604_v58 = vadd.s32 16, %v3515_v15 }
 0x284   : > { %1928 = vpow2.f32 %v1446_v44  ;;  %1484 = vadd.xlane.f32.xlu0 %v1925_v49  ;;  %1476 = vadd.xlane.f32.xlu1 %v1923_v42 }
 0x285   : > { %1930 = vpow2.f32 %v1454_v25  ;;  %v1621_v23 = vadd.s32 %v3521_v38, %v1604_v58 }
 0x286   : > { %1932 = vpow2.f32 %v1438_v51  ;;  %v1619_v51 = vadd.s32 %v3521_v38, %v3515_v15 }
 0x287   : > { %1934 = vpow2.f32 %v1450_v36  ;;  %v3506_v37 = vpop.xlane.xlu2 %1562  ;;  %v1605_v36 = vadd.s32 24, %v3515_v15  ;;  %vm1637_vm3 = vcmp.lt.s32.totalorder %v1621_v23, 300 }
 0x288   : > { %vm1635_vm1 = vcmp.lt.s32.totalorder %v1619_v51, 300 }
 0x28a   : > { %v1929_v53 = vpop.eup %1928 }
 0x28b   : > { %v1931_v31 = vpop.eup %1930 }
 0x28c   : > { %1478 = vadd.xlane.f32.xlu0 %v1929_v53  ;;  %1462 = vadd.xlane.f32.xlu1 %v1927_v8  ;;  %v1933_v55 = vpop.eup %1932  ;;  %v1620_v8 = vadd.s32 %v3521_v38, %v1603_v29 }
 0x28d   : > { %1486 = vadd.xlane.f32.xlu2 %v1931_v31  ;;  %v1935_v33 = vpop.eup %1934 }
 0x28e   : > { %vm1636_vm15 = vcmp.lt.s32.totalorder %v1620_v8, 300 }
 0x294   : > { %1572 = vadd.xlane.f32.xlu0 %v1546_v50  ;;  %1470 = vadd.xlane.f32.xlu1 %v1933_v55 }
 0x295   : > { %1576 = vadd.xlane.f32.xlu2 %v1548_v26 }
 0x29c   : > { %1578 = vadd.xlane.f32.xlu0 %v1549_v48  ;;  %1482 = vadd.xlane.f32.xlu1 %v1935_v33 }
 0x29d   : > { %1582 = vadd.xlane.f32.xlu2 %v1551_v62 }
 0x2a4   : > { %1570 = vadd.xlane.f32.xlu1 %v1545_v21  ;;  %v1607_v21 = vadd.s32 40, %v3515_v15 }
 0x2ac   : > { %1574 = vadd.xlane.f32.xlu1 %v1547_v20  ;;  %v1622_v20 = vadd.s32 %v3521_v38, %v1605_v36 }
 0x2ae   : > { %vm1638_vm8 = vcmp.lt.s32.totalorder %v1622_v20, 300  ;;  %v1612_v20 = vadd.s32 80, %v3515_v15 }
 0x2b4   : > { %1580 = vadd.xlane.f32.xlu1 %v1550_v1 }
 0x2c1   : > { %v1465_v7 = vpop.xlane.xlu2 %1464 }
 0x2c6   : > { %v1457_v3 = vpop.xlane.xlu1 %1456 }
 0x2cd   : > { %v3510_v28 = vpop.xlane.xlu2 %1480 }
 0x2d5   : > { %v1459_v17 = vpop.xlane.xlu2 %1458 }
 0x2d6   : > { %v1473_v46 = vpop.xlane.xlu0 %1472  ;;  %1936 = vlog2.f32 %v1459_v17 }
 0x2d7   : > { %1938 = vlog2.f32 %v1457_v3 }
 0x2dc   : > { %v1937_v43 = vpop.eup %1936 }
 0x2dd   : > { %v1939_v2 = vpop.eup %1938  ;;  %v1491_v34 = vmul.f32 0.6931472, %v1937_v43 }
 0x2de   : > { %v1467_v56 = vpop.xlane.xlu0 %1466  ;;  %v1489_v6 = vmul.f32 0.6931472, %v1939_v2  ;;  %v1624_v2 = vadd.s32 %v3521_v38, %v1607_v21 }
 0x2df   : > { %v1521_v42 = vadd.f32 %v1491_v34, %v3408_v22  ;;  %v1475_v44 = vpop.xlane.xlu2 %1474 }
 0x2e0   : > { %v1520_v39 = vadd.f32 %v1489_v6, %v3400_v18  ;;  %v1606_v18 = vadd.s32 32, %v3515_v15  ;;  %vm1640_vm4 = vcmp.lt.s32.totalorder %v1624_v2, 300 }
 0x2e1   : > { %v1585_v22 = vsub.f32 %v1521_v42, %v3416_v54 }
 0x2e2   : > { %v1584_v26 = vsub.f32 %v1520_v39, %v3404_v45  ;;  %v1623_v17 = vadd.s32 %v3521_v38, %v1606_v18 }
 0x2e3   : > { %v1652_v1 = vsel %vm1636_vm15, %v1585_v22, 0.0  ;;  %vm1690_vm15 = vcmask 0  }
 0x2e4   : > { %vm1639_vm11 = vcmp.lt.s32.totalorder %v1623_v17, 300 }
 0x2e7   : > { %v1461_v30 = vpop.xlane.xlu0 %1460 }
 0x2e8   : > { %1940 = vlog2.f32 %v1461_v30 }
 0x2e9   : > { %1942 = vlog2.f32 %v1465_v7 }
 0x2ea   : > { %1944 = vlog2.f32 %v1467_v56  ;;  %v1651_v56 = vsel %vm1635_vm1, %v1584_v26, 0.0 }
 0x2ee   : > { %v1941_v57 = vpop.eup %1940 }
 0x2ef   : > { %v1469_v11 = vpop.xlane.xlu1 %1468  ;;  %v3517_v14 = vpop.xlane.xlu0 %1566  ;;  %v1493_v16 = vmul.f32 0.6931472, %v1941_v57  ;;  %v1609_v57 = vadd.s32 56, %v3515_v15 }
 0x2f0   : > { %1946 = vlog2.f32 %v1469_v11  ;;  %v1943_v49 = vpop.eup %1942  ;;  %v1569_v11 = vpop.xlane.xlu2 %1568 }
 0x2f1   : > { %v1522_v53 = vadd.f32 %v1493_v16, %v3432_v41  ;;  %v1945_v31 = vpop.eup %1944  ;;  %v1497_v55 = vmul.f32 0.6931472, %v1943_v49 }
 0x2f2   : > { %v1499_v48 = vmul.f32 0.6931472, %v1945_v31 }
 0x2f3   : > { %v1586_v41 = vsub.f32 %v1522_v53, %v3452_v59  ;;  %v1524_v54 = vadd.f32 %v1497_v55, %v3396_v24  ;;  %v1668_v24 = vadd.f32 %v1652_v1, %v1651_v56 }
 0x2f4   : > { %v1525_v59 = vadd.f32 %v1499_v48, %v3420_v4 }
 0x2f5   : > { %v1653_v30 = vsel %vm1637_vm3, %v1586_v41, 0.0  ;;  %v1588_v34 = vsub.f32 %v1524_v54, %v3454_v61 }
 0x2f6   : > { %v1947_v50 = vpop.eup %1946  ;;  %v1669_v4 = vadd.f32 %v1668_v24, %v1653_v30  ;;  %v1589_v58 = vsub.f32 %v1525_v59, %v3506_v37  ;;  %v1611_v37 = vadd.s32 72, %v3515_v15  ;;  %v1629_v59 = vadd.s32 %v3521_v38, %v1612_v20 }
 0x2f7   : > { %v3512_v12 = vpop.xlane.xlu1 %1476  ;;  %v3535_v33 = vpop.xlane.xlu0 %1484  ;;  %v1501_v45 = vmul.f32 0.6931472, %v1947_v50 }
 0x2f8   : > { %v1656_v31 = vsel %vm1640_vm4, %v1589_v58, 0.0  ;;  %vm1645_vm0 = vcmp.lt.s32.totalorder %v1629_v59, 300 }
 0x2f9   : > { %v1526_v6 = vadd.f32 %v1501_v45, %v3438_v19  ;;  %v1626_v19 = vadd.s32 %v3521_v38, %v1609_v57 }
 0x2fb   : > { %v1590_v8 = vsub.f32 %v1526_v6, %v3508_v10  ;;  %vm1642_vm12 = vcmp.lt.s32.totalorder %v1626_v19, 300 }
 0x2ff   : > { %v1463_v25 = vpop.xlane.xlu1 %1462  ;;  %v1479_v61 = vpop.xlane.xlu0 %1478 }
 0x300   : > { %1948 = vlog2.f32 %v1463_v25  ;;  %v1487_v36 = vpop.xlane.xlu2 %1486 }
 0x301   : > { %1950 = vlog2.f32 %v1473_v46  ;;  %v1608_v46 = vadd.s32 48, %v3515_v15 }
 0x303   : > { %v1625_v16 = vadd.s32 %v3521_v38, %v1608_v46  ;;  %v1614_v46 = vadd.s32 96, %v3515_v15 }
 0x305   : > { %vm1641_vm10 = vcmp.lt.s32.totalorder %v1625_v16, 300 }
 0x306   : > { %v1949_v62 = vpop.eup %1948  ;;  %v1657_v18 = vsel %vm1641_vm10, %v1590_v8, 0.0 }
 0x307   : > { %v1495_v7 = vmul.f32 0.6931472, %v1949_v62  ;;  %v1471_v3 = vpop.xlane.xlu1 %1470  ;;  %v1951_v0 = vpop.eup %1950 }
 0x308   : > { %1952 = vlog2.f32 %v1471_v3  ;;  %v1505_v25 = vmul.f32 0.6931472, %v1951_v0  ;;  %v1613_v3 = vadd.s32 88, %v3515_v15  ;;  %v1577_v57 = vpop.xlane.xlu2 %1576 }
 0x309   : > { %1954 = vlog2.f32 %v1475_v44  ;;  %v1523_v43 = vadd.f32 %v1495_v7, %v3436_v5  ;;  %v1610_v5 = vadd.s32 64, %v3515_v15 }
 0x30a   : > { %1956 = vlog2.f32 %v3512_v12  ;;  %v1528_v50 = vadd.f32 %v1505_v25, %v3414_v32  ;;  %v1630_v0 = vadd.s32 %v3521_v38, %v1613_v3 }
 0x30b   : > { %v1587_v29 = vsub.f32 %v1523_v43, %v3504_v40  ;;  %v1655_v40 = vsel %vm1639_vm11, %v1588_v34, 0.0  ;;  %1958 = vlog2.f32 %v3510_v28  ;;  %v1627_v23 = vadd.s32 %v3521_v38, %v1610_v5 }
 0x30c   : > { %1960 = vlog2.f32 %v1479_v61  ;;  %v1628_v28 = vadd.s32 %v3521_v38, %v1611_v37  ;;  %v1592_v41 = vsub.f32 %v1528_v50, %v1569_v11  ;;  %v1573_v11 = vpop.xlane.xlu0 %1572  ;;  %vm1646_vm7 = vcmp.lt.s32.totalorder %v1630_v0, 300 }
 0x30d   : > { %v1654_v42 = vsel %vm1638_vm8, %v1587_v29, 0.0  ;;  %vm1643_vm9 = vcmp.lt.s32.totalorder %v1627_v23, 300  ;;  %v1615_v29 = vadd.s32 104, %v3515_v15 }
 0x30e   : > { %v1953_v44 = vpop.eup %1952  ;;  %v1670_v49 = vadd.f32 %v1669_v4, %v1654_v42  ;;  %vm1644_vm6 = vcmp.lt.s32.totalorder %v1628_v28, 300 }
 0x30f   : > { %v1955_v39 = vpop.eup %1954  ;;  %v1503_v51 = vmul.f32 0.6931472, %v1953_v44  ;;  %v1483_v53 = vpop.xlane.xlu1 %1482  ;;  %v1616_v44 = vadd.s32 112, %v3515_v15 }
 0x310   : > { %v1671_v12 = vadd.f32 %v1670_v49, %v1655_v40  ;;  %v1507_v22 = vmul.f32 0.6931472, %v1955_v39  ;;  %v1957_v26 = vpop.eup %1956  ;;  %1962 = vlog2.f32 %v1483_v53  ;;  %v1617_v39 = vadd.s32 120, %v3515_v15 }
 0x311   : > { %v1527_v55 = vadd.f32 %v1503_v51, %v3470_v63  ;;  %v1959_v54 = vpop.eup %1958  ;;  %v1509_v63 = vmul.f32 0.6931472, %v1957_v26  ;;  %1964 = vlog2.f32 %v3535_v33  ;;  %v1631_v33 = vadd.s32 %v3521_v38, %v1614_v46 }
 0x312   : > { %v1672_v10 = vadd.f32 %v1671_v12, %v1656_v31  ;;  %v1529_v1 = vadd.f32 %v1507_v22, %v3422_v47  ;;  %v1961_v45 = vpop.eup %1960  ;;  %1966 = vlog2.f32 %v1487_v36  ;;  %v1513_v43 = vmul.f32 0.6931472, %v1959_v54 }
 0x313   : > { %v1591_v48 = vsub.f32 %v1527_v55, %v3517_v14  ;;  %v1659_v14 = vsel %vm1643_vm9, %v1592_v41, 0.0  ;;  %v1511_v47 = vmul.f32 0.6931472, %v1961_v45  ;;  %v1530_v2 = vadd.f32 %v1509_v63, %v3442_v9  ;;  %v1583_v55 = vpop.xlane.xlu2 %1582 }
 0x314   : > { %v1673_v62 = vadd.f32 %v1672_v10, %v1657_v18  ;;  %v1532_v58 = vadd.f32 %v1513_v43, %v3406_v35  ;;  %vm1647_vm5 = vcmp.lt.s32.totalorder %v1631_v33, 300  ;;  %v1632_v40 = vadd.s32 %v3521_v38, %v1615_v29 }
 0x315   : > { %v1658_v21 = vsel %vm1642_vm12, %v1591_v48, 0.0  ;;  %v1594_v34 = vsub.f32 %v1530_v2, %v1573_v11  ;;  %v1531_v5 = vadd.f32 %v1511_v47, %v3462_v13  ;;  %v1579_v13 = vpop.xlane.xlu0 %1578  ;;  %v1633_v12 = vadd.s32 %v3521_v38, %v1616_v44 }
 0x316   : > { %v1674_v32 = vadd.f32 %v1673_v62, %v1658_v21  ;;  %v1963_v17 = vpop.eup %1962  ;;  %v1596_v25 = vsub.f32 %v1532_v58, %v1577_v57  ;;  %v1634_v36 = vadd.s32 %v3521_v38, %v1617_v39  ;;  %vm1648_vm2 = vcmp.lt.s32.totalorder %v1632_v40, 300 }
 0x317   : > { %v1571_v7 = vpop.xlane.xlu1 %1570  ;;  %v1515_v6 = vmul.f32 0.6931472, %v1963_v17  ;;  %v1965_v16 = vpop.eup %1964  ;;  %v1661_v49 = vsel %vm1645_vm0, %v1594_v34, 0.0  ;;  %vm1649_vm13 = vcmp.lt.s32.totalorder %v1633_v12, 300 }
 0x318   : > { %v1593_v56 = vsub.f32 %v1529_v1, %v1571_v7  ;;  %v1675_v30 = vadd.f32 %v1674_v32, %v1659_v14  ;;  %v1967_v42 = vpop.eup %1966  ;;  %v1517_v51 = vmul.f32 0.6931472, %v1965_v16  ;;  %v1663_v31 = vsel %vm1647_vm5, %v1596_v25, 0.0  ;;  %v1667_v32 = vld [vmem:[#allocation3] sm:$0x1] }
 0x319   : > { %v1533_v61 = vadd.f32 %v1515_v6, %v3428_v27  ;;  %v1519_v35 = vmul.f32 0.6931472, %v1967_v42  ;;  %vm1650_vm14 = vcmp.lt.s32.totalorder %v1634_v36, 300 }
 0x31a   : > { %v1660_v24 = vsel %vm1644_vm6, %v1593_v56, 0.0  ;;  %v1534_v15 = vadd.f32 %v1517_v51, %v3430_v60 }
 0x31b   : > { %v1676_v4 = vadd.f32 %v1675_v30, %v1660_v24  ;;  %v1597_v23 = vsub.f32 %v1533_v61, %v1579_v13  ;;  %v1535_v22 = vadd.f32 %v1519_v35, %v3464_v52 }
 0x31d   : > { %v1677_v8 = vadd.f32 %v1676_v4, %v1661_v49  ;;  %v1599_v10 = vsub.f32 %v1535_v22, %v1583_v55  ;;  %v1664_v26 = vsel %vm1648_vm2, %v1597_v23, 0.0 }
 0x31f   : > { %v1575_v9 = vpop.xlane.xlu1 %1574  ;;  %v1666_v62 = vsel %vm1650_vm14, %v1599_v10, 0.0 }
 0x320   : > { %v1595_v19 = vsub.f32 %v1531_v5, %v1575_v9 }
 0x322   : > { %v1662_v53 = vsel %vm1646_vm7, %v1595_v19, 0.0 }
 0x323   : > { %v1678_v37 = vadd.f32 %v1677_v8, %v1662_v53 }
 0x325   : > { %v1679_v27 = vadd.f32 %v1678_v37, %v1663_v31 }
 0x327   : > { %v1581_v50 = vpop.xlane.xlu1 %1580  ;;  %v1680_v48 = vadd.f32 %v1679_v27, %v1664_v26 }
 0x328   : > { %v1598_v18 = vsub.f32 %v1534_v15, %v1581_v50 }
 0x32a   : > { %v1665_v28 = vsel %vm1649_vm13, %v1598_v18, 0.0 }
 0x32b   : > { %v1681_v41 = vadd.f32 %v1680_v48, %v1665_v28 }
 0x32d   : > { %v1682_v21 = vadd.f32 %v1681_v41, %v1666_v62 }
 0x32f   : > { %v1683_v20 = vrot.slane %v1682_v21, 4 }
 0x331   : > { %v1684_v38 = vadd.f32 %v1683_v20, %v1682_v21 }
 0x333   : > { %v1685_v54 = vrot.slane %v1684_v38, 2 }
 0x335   : > { %v1686_v63 = vadd.f32 %v1685_v54, %v1684_v38 }
 0x337   : > { %v1687_v1 = vrot.slane %v1686_v63, 1 }
 0x339   : > { %v1688_v52 = vadd.f32 %v1687_v1, %v1686_v63  ;;  %1695 = sbr.rel (%p1801_p5) target bundleno = 840 (0x348), region = 40 }
 0x33b   : > { %v1689_v60 = vadd.f32 %v1688_v52, %v1667_v32 }
 0x33d   : > { %1691 = vst.msk [vmem:[#allocation3] sm:$0x1] %vm1690_vm15, %v1689_v60 }
 0x344   : > { %v1696_v45 = vld [vmem:[#allocation3] sm:$0x1] }
 0x345   : > { %v1697_v7 = vmul.f32 0.0033333334, %v1696_v45 }
 0x347   : > { %1698 = vst.msk [vmem:[#allocation3] sm:$0x1] %vm1690_vm15, %v1697_v7 }
 0x348 PF: > { %p1822_p6 = scmp.eq.s32.totalorder %s2037_s13, 2  ;;  %s2010_s4 = smov [#allocation3]  }
 0x349   : > { %s1705_s5 = sshll.u32 %s2010_s4, 4  ;;  %s1707_s8 = sshll.u32 %s3594_s3, 4  ;;  %s1706_s5 = int_to_ptr.vmem [resolvable:$true] %s1705_s5  ;;  %s1708_s8 = int_to_ptr.hbm [resolvable:$true] %s1707_s8 }
 0x34a   : > { %1819 = dma.vmem_to_hbm [thread:$0]  (%p1822_p6), %s1706_s5, 16, %s1708_s8, [#allocation4]  }
 0x34b   : > { %2001 = dma.done.wait (%p1822_p6), [#allocation4], 16  }
 0x34c   : > { %2003 = vsyncadd (%p1822_p6), [#allocation4], 4294967280 }
 0x34d PF: > { %s14_s12 = sadd.s32 1, %s2006_s12  }
 0x34e   : > { %p11_p7 = scmp.ge.s32.totalorder %s14_s12, 5  }
 0x350   :  { %13 = sbr.rel (!%p11_p7) target bundleno = 1 (0x1), region = 70 }
 0x355   :  { %1721 = vsyncpa [#allocation4], 1 }
 0x356   :  { %1723 = vsyncpa [#allocation4 + $0x1], 1 }

</bundles_post_ra>
